<compile_context>
chip_gen: v5e
topology: v5e:2x2
jax: 0.10.0
libtpu: 0.0.40
codegen_flags: <defaults>
</compile_context>

<pallas_src>
import jax
import jax.numpy as jnp
from jax.experimental import pallas as pl
from jax.experimental.pallas import tpu as pltpu

# ---- CNN2 hyperparameters (match the PyTorch module defaults) ----
FILTER_SIZES = (2, 3, 4, 5)
N_FS = len(FILTER_SIZES)
MAX_FS = max(FILTER_SIZES)
N_FILTERS = 100
FC1_DIM = 100
OUTPUT_DIM = 14

# Lane-aligned padded dims used inside the kernel.
F_PAD = 128                    # filters padded to a full lane width
CAT_PAD = N_FS * F_PAD         # 512: concat of pooled features
FC1_PAD = 128
OUT_PAD = 128                  # lane-dense output block; sliced to 14 outside


def _round_up(x, m):
    return (x + m - 1) // m * m


def cnn2_kernel(slab_ref, mask_ref, convw_ref, fc1w_ref, fc1b_ref,
                fc2w_ref, fc2b_ref, out_ref):
    # slab_ref : [TB*S, K_PAD] bf16  lane-dense im2col slab; column K holds 1.0
    #                                 (bias column), columns > K are zero.
    # mask_ref : [S, CAT_PAD]  bf16  1.0 on valid conv positions, else 0.0
    # convw_ref: [K_PAD, CAT_PAD] bf16 fused conv weights; row K = conv bias
    # fc1w_ref : [CAT_PAD, FC1_PAD] bf16   fc1b_ref: [1, FC1_PAD] f32
    # fc2w_ref : [FC1_PAD, OUT_PAD] bf16   fc2b_ref: [1, OUT_PAD] f32
    # out_ref  : [TB, OUT_PAD] f32
    tb = out_ref.shape[0]
    m = slab_ref.shape[0]
    S = m // tb
    cat = convw_ref.shape[1]

    # One fused MXU matmul for every filter size, shift AND the bias
    # (bias column in the slab pairs with the bias row in convw), f32 acc.
    conv = jnp.dot(slab_ref[...], convw_ref[...],
                   preferred_element_type=jnp.float32)        # [TB*S, CAT_PAD]
    conv = jnp.maximum(conv, 0.0)                             # ReLU (f32 VPU)

    # Zero the invalid tail positions.  NOTE: correct ONLY because the ReLU
    # output is >= 0, so masked-to-0 positions can never win the max below.
    conv = conv.reshape(tb, S, cat) * mask_ref[...]
    pooled = jnp.max(conv, axis=1)                            # [TB, CAT_PAD]

    # TODO(synk): nn.Dropout is treated as identity (inference / eval mode).
    hidden = jnp.maximum(
        jnp.dot(pooled.astype(jnp.bfloat16), fc1w_ref[...],
                preferred_element_type=jnp.float32) + fc1b_ref[...],
        0.0)                                                  # [TB, FC1_PAD]
    logits = (jnp.dot(hidden.astype(jnp.bfloat16), fc2w_ref[...],
                      preferred_element_type=jnp.float32)
              + fc2b_ref[...])                                # [TB, OUT_PAD]
    out_ref[...] = logits


def _pack_params(params, k_pad):
    """Fuse / pad PyTorch-layout parameters into the kernel layout."""
    conv_w = params["conv_w"]                                # [n_fs, MAX_FS, E, F]
    n_fs, max_fs, E, F = conv_w.shape
    K = max_fs * E
    conv_w = jnp.pad(conv_w, ((0, 0), (0, 0), (0, 0), (0, F_PAD - F)))
    # rows ordered by (shift d, embed e); cols by (filter-size segment, filter)
    w_conv = jnp.transpose(conv_w, (1, 2, 0, 3)).reshape(K, CAT_PAD)
    w_conv = jnp.pad(w_conv, ((0, k_pad - K), (0, 0)))
    # fold the conv bias into row K (the slab's 1.0 column)
    b_row = jnp.pad(params["conv_b"], ((0, 0), (0, F_PAD - F))).reshape(CAT_PAD)
    w_conv = w_conv.at[K, :].set(b_row)

    # fc1 rows are indexed by (filter-size segment, filter): re-space 100 -> 128.
    fc1_w = params["fc1_w"].reshape(n_fs, F, FC1_DIM)
    fc1_w = jnp.pad(fc1_w, ((0, 0), (0, F_PAD - F), (0, FC1_PAD - FC1_DIM)))
    fc1_w = fc1_w.reshape(CAT_PAD, FC1_PAD)
    fc1_b = jnp.pad(params["fc1_b"], ((0, 0), (0, FC1_PAD - FC1_DIM)))
    fc2_w = jnp.pad(params["fc2_w"],
                    ((0, FC1_PAD - FC1_DIM), (0, OUT_PAD - OUTPUT_DIM)))
    fc2_b = jnp.pad(params["fc2_b"], ((0, 0), (0, OUT_PAD - OUTPUT_DIM)))
    return (w_conv.astype(jnp.bfloat16),
            fc1_w.astype(jnp.bfloat16), fc1_b.astype(jnp.float32),
            fc2_w.astype(jnp.bfloat16), fc2_b.astype(jnp.float32))


def _valid_mask(S):
    """[S, CAT_PAD] bf16 mask: 1.0 where the conv output position is valid."""
    t = jnp.arange(S, dtype=jnp.int32)[:, None]              # [S, 1]
    cols = []
    for fs in FILTER_SIZES:
        valid = (t < (S - fs + 1)).astype(jnp.bfloat16)
        cols.append(jnp.broadcast_to(valid, (S, F_PAD)))
    return jnp.concatenate(cols, axis=1)


def _build_slab(embedded, S, k_pad):
    """Lane-dense im2col slab built in the wrapper (pure layout plumbing).

    embedded: [b_pad, S, E] bf16 -> [b_pad*S, k_pad] bf16 where row (b, t)
    holds [emb[t], emb[t+1], ..., emb[t+MAX_FS-1], 1.0(bias col), 0...].
    Time positions >= S are explicit zeros.
    """
    b_pad, _, E = embedded.shape
    K = MAX_FS * E
    emb_pad = jnp.pad(embedded, ((0, 0), (0, MAX_FS - 1), (0, 0)))
    slab = jnp.concatenate([emb_pad[:, d:d + S, :] for d in range(MAX_FS)],
                           axis=2)                            # [b_pad, S, K]
    slab = jnp.pad(slab, ((0, 0), (0, 0), (0, k_pad - K)))
    slab = slab.at[:, :, K].set(jnp.bfloat16(1.0))            # bias column
    return slab.reshape(b_pad * S, k_pad)


def cnn2_forward(text, params, *, tb=None, target_m=4096):
    """text: [B, S] int32 token ids. Returns [B, OUTPUT_DIM] float32 logits."""
    B, S = text.shape
    assert S >= MAX_FS, "sequence shorter than largest filter (PyTorch would error)"
    emb_table = params["embedding"].astype(jnp.bfloat16)
    E = emb_table.shape[1]
    k_pad = _round_up(MAX_FS * E + 1, 128)   # conv-matmul K padded lane-dense

    if tb is None:
        # Batch tile: TB*S ~ target_m rows of MXU work per grid step,
        # TB a multiple of 8 (sublane aligned).
        tb = _round_up(max(1, target_m // S), 8)
        if B > 8:
            # keep >= 2 grid steps so v7x megacore can shard over its 2 TCs
            tb = min(tb, _round_up(pl.cdiv(B, 2), 8))
        else:
            tb = min(tb, _round_up(B, 8))
    b_pad = _round_up(B, tb)

    # Embedding gather + explicit zero padding (time tail and batch tail are
    # real zeros -> no reliance on any particular token row of the table).
    embedded = jnp.take(emb_table, text, axis=0)              # [B, S, E] bf16
    embedded = jnp.pad(embedded, ((0, b_pad - B), (0, 0), (0, 0)))
    slab = _build_slab(embedded, S, k_pad)                    # [b_pad*S, k_pad]

    mask = _valid_mask(S)
    w_conv, fc1_w, fc1_b, fc2_w, fc2_b = _pack_params(params, k_pad)

    flops = (2 * b_pad * S * k_pad * CAT_PAD
             + 2 * b_pad * CAT_PAD * FC1_PAD
             + 2 * b_pad * FC1_PAD * OUT_PAD)
    bytes_accessed = (b_pad * S * k_pad * 2          # slab (bf16)
                      + S * CAT_PAD * 2              # mask
                      + k_pad * CAT_PAD * 2          # conv weights
                      + CAT_PAD * FC1_PAD * 2 + FC1_PAD * 4
                      + FC1_PAD * OUT_PAD * 2 + OUT_PAD * 4
                      + b_pad * OUT_PAD * 4)         # output
    cost = pl.CostEstimate(flops=flops, transcendentals=0,
                           bytes_accessed=bytes_accessed)

    const2 = lambda i: (0, 0)
    out = pl.pallas_call(
        cnn2_kernel,
        out_shape=jax.ShapeDtypeStruct((b_pad, OUT_PAD), jnp.float32),
        grid=(b_pad // tb,),
        in_specs=[
            pl.BlockSpec((tb * S, k_pad), lambda i: (i, 0)),   # im2col slab
            pl.BlockSpec((S, CAT_PAD), const2),                # valid mask
            pl.BlockSpec((k_pad, CAT_PAD), const2),            # fused conv w
            pl.BlockSpec((CAT_PAD, FC1_PAD), const2),
            pl.BlockSpec((1, FC1_PAD), const2),
            pl.BlockSpec((FC1_PAD, OUT_PAD), const2),
            pl.BlockSpec((1, OUT_PAD), const2),
        ],
        out_specs=pl.BlockSpec((tb, OUT_PAD), lambda i: (i, 0)),
        compiler_params=pltpu.CompilerParams(
            dimension_semantics=("parallel",),
            vmem_limit_bytes=48 * 1024 * 1024),
        cost_estimate=cost,
    )(slab, mask, w_conv, fc1_w, fc1_b, fc2_w, fc2_b)
    return out[:B, :OUTPUT_DIM]


def init_params(key, vocab_size, embedding_dim, pad_idx=0):
    """Deterministic synthetic parameters with CNN2's shapes (PyTorch layout)."""
    keys = jax.random.split(key, 12)
    emb = 0.1 * jax.random.normal(keys[0], (vocab_size, embedding_dim),
                                  jnp.float32)
    emb = emb.at[pad_idx].set(0.0)  # padding_idx row

    conv_w, conv_b = [], []
    for i, fs in enumerate(FILTER_SIZES):
        w = 0.1 * jax.random.normal(keys[1 + i],
                                    (fs, embedding_dim, N_FILTERS), jnp.float32)
        conv_w.append(jnp.pad(w, ((0, MAX_FS - fs), (0, 0), (0, 0))))
        conv_b.append(0.01 * jax.random.normal(keys[5 + i], (N_FILTERS,),
                                               jnp.float32))
    conv_w = jnp.stack(conv_w, axis=0)               # [n_fs, MAX_FS, E, F]
    conv_b = jnp.stack(conv_b, axis=0)               # [n_fs, F]

    fc1_w = 0.05 * jax.random.normal(keys[9], (N_FS * N_FILTERS, FC1_DIM),
                                     jnp.float32)
    fc1_b = 0.01 * jax.random.normal(keys[10], (1, FC1_DIM), jnp.float32)
    fc2_w = 0.05 * jax.random.normal(keys[11], (FC1_DIM, OUTPUT_DIM),
                                     jnp.float32)
    fc2_b = jnp.zeros((1, OUTPUT_DIM), jnp.float32)
    return dict(embedding=emb, conv_w=conv_w, conv_b=conv_b,
                fc1_w=fc1_w, fc1_b=fc1_b, fc2_w=fc2_w, fc2_b=fc2_b)


def cnn2_reference(text, params):
    """Pure-JAX f32 reference matching the PyTorch forward (dropout=identity)."""
    emb = jnp.take(params["embedding"], text, axis=0)         # [B, S, E]
    B, S, E = emb.shape
    pooled = []
    for fi, fs in enumerate(FILTER_SIZES):
        L = S - fs + 1
        acc = jnp.zeros((B, L, N_FILTERS), jnp.float32)
        for d in range(fs):
            acc = acc + jnp.einsum("bse,ef->bsf", emb[:, d:d + L, :],
                                   params["conv_w"][fi, d])
        acc = jnp.maximum(acc + params["conv_b"][fi][None, None, :], 0.0)
        pooled.append(jnp.max(acc, axis=1))                    # [B, F]
    cat = jnp.concatenate(pooled, axis=1)                      # [B, 4F]
    hidden = jnp.maximum(cat @ params["fc1_w"] + params["fc1_b"], 0.0)
    return hidden @ params["fc2_w"] + params["fc2_b"]


if __name__ == "__main__":
    key = jax.random.PRNGKey(0)
    k_params, k_text = jax.random.split(key)

    VOCAB = 50
    EMB_DIM = 32
    BATCH = 4
    SEQ = 16
    PAD_IDX = 0

    params = init_params(k_params, VOCAB, EMB_DIM, pad_idx=PAD_IDX)
    text = jax.random.randint(k_text, (BATCH, SEQ), 0, VOCAB, dtype=jnp.int32)

    out = jax.block_until_ready(cnn2_forward(text, params))
    ref = cnn2_reference(text, params)

    assert out.shape == (BATCH, OUTPUT_DIM)
    # Intentional precision tradeoff: bf16 embeddings / conv / fc operands with
    # f32 MXU accumulation vs an all-f32 PyTorch-semantics reference.
    assert jnp.allclose(out, ref, rtol=2e-2, atol=2e-2), (
        "mismatch vs reference: max abs diff "
        f"{float(jnp.max(jnp.abs(out - ref)))}")

    print("KERNEL_OK")
</pallas_src>

<mosaic_0001>
module attributes {stable_mosaic.version = 11 : i64} {
  func.func @cnn2_kernel(%arg0: i32, %arg1: memref<128x256xbf16, #tpu.memory_space<vmem>>, %arg2: memref<16x512xbf16, #tpu.memory_space<vmem>>, %arg3: memref<256x512xbf16, #tpu.memory_space<vmem>>, %arg4: memref<512x128xbf16, #tpu.memory_space<vmem>>, %arg5: memref<1x128xf32, #tpu.memory_space<vmem>>, %arg6: memref<128x128xbf16, #tpu.memory_space<vmem>>, %arg7: memref<1x128xf32, #tpu.memory_space<vmem>>, %arg8: memref<8x128xf32, #tpu.memory_space<vmem>>) attributes {dimension_semantics = [#tpu.dimension_semantics<parallel>], iteration_bounds = array<i64: 1>, scalar_prefetch = 0 : i64, scratch_operands = 0 : i64, tpu.core_type = #tpu.core_type<tc>, window_params = [{transform_indices = @transform_0, window_bounds = array<i64: 128, 256>}, {pipeline_mode = #tpu.pipeline_mode<synchronous>, transform_indices = @transform_1, window_bounds = array<i64: 16, 512>}, {pipeline_mode = #tpu.pipeline_mode<synchronous>, transform_indices = @transform_2, window_bounds = array<i64: 256, 512>}, {pipeline_mode = #tpu.pipeline_mode<synchronous>, transform_indices = @transform_3, window_bounds = array<i64: 512, 128>}, {pipeline_mode = #tpu.pipeline_mode<synchronous>, transform_indices = @transform_4, window_bounds = array<i64: 1, 128>}, {pipeline_mode = #tpu.pipeline_mode<synchronous>, transform_indices = @transform_5, window_bounds = array<i64: 128, 128>}, {pipeline_mode = #tpu.pipeline_mode<synchronous>, transform_indices = @transform_6, window_bounds = array<i64: 1, 128>}, {transform_indices = @transform_7, window_bounds = array<i64: 8, 128>}]} {
    %c0 = arith.constant 0 : index
    %c0_0 = arith.constant 0 : index
    %0 = vector.load %arg1[%c0, %c0_0] : memref<128x256xbf16, #tpu.memory_space<vmem>>, vector<128x256xbf16>
    %c0_1 = arith.constant 0 : index
    %c0_2 = arith.constant 0 : index
    %1 = vector.load %arg3[%c0_1, %c0_2] : memref<256x512xbf16, #tpu.memory_space<vmem>>, vector<256x512xbf16>
    %cst = arith.constant dense<0.000000e+00> : vector<128x512xf32>
    %2 = tpu.matmul %0, %1, %cst {dimension_numbers = #tpu.dot_dimension_numbers<[1], [0], [0], [1], [0, 0, 1, 1], [], []>} : vector<128x256xbf16>, vector<256x512xbf16>, vector<128x512xf32> -> vector<128x512xf32>
    %cst_3 = arith.constant 0.000000e+00 : f32
    %3 = vector.broadcast %cst_3 : f32 to vector<128x512xf32>
    %4 = arith.maximumf %2, %3 : vector<128x512xf32>
    %5 = vector.shape_cast %4 : vector<128x512xf32> to vector<8x16x512xf32>
    %c0_4 = arith.constant 0 : index
    %c0_5 = arith.constant 0 : index
    %6 = vector.load %arg2[%c0_4, %c0_5] : memref<16x512xbf16, #tpu.memory_space<vmem>>, vector<16x512xbf16>
    %7 = arith.extf %6 : vector<16x512xbf16> to vector<16x512xf32>
    %8 = vector.shape_cast %7 : vector<16x512xf32> to vector<1x16x512xf32>
    %9 = vector.broadcast %8 : vector<1x16x512xf32> to vector<8x16x512xf32>
    %10 = arith.mulf %5, %9 : vector<8x16x512xf32>
    %cst_6 = arith.constant dense<0xFF800000> : vector<8x512xf32>
    %11 = vector.multi_reduction <maximumf>, %10, %cst_6 [1] : vector<8x16x512xf32> to vector<8x512xf32>
    %12 = arith.truncf %11 : vector<8x512xf32> to vector<8x512xbf16>
    %c0_7 = arith.constant 0 : index
    %c0_8 = arith.constant 0 : index
    %13 = vector.load %arg4[%c0_7, %c0_8] : memref<512x128xbf16, #tpu.memory_space<vmem>>, vector<512x128xbf16>
    %cst_9 = arith.constant dense<0.000000e+00> : vector<8x128xf32>
    %14 = tpu.matmul %12, %13, %cst_9 {dimension_numbers = #tpu.dot_dimension_numbers<[1], [0], [0], [1], [0, 0, 1, 1], [], []>} : vector<8x512xbf16>, vector<512x128xbf16>, vector<8x128xf32> -> vector<8x128xf32>
    %c0_10 = arith.constant 0 : index
    %c0_11 = arith.constant 0 : index
    %15 = vector.load %arg5[%c0_10, %c0_11] : memref<1x128xf32, #tpu.memory_space<vmem>>, vector<1x128xf32>
    %16 = vector.broadcast %15 : vector<1x128xf32> to vector<8x128xf32>
    %17 = arith.addf %14, %16 : vector<8x128xf32>
    %cst_12 = arith.constant 0.000000e+00 : f32
    %18 = vector.broadcast %cst_12 : f32 to vector<8x128xf32>
    %19 = arith.maximumf %17, %18 : vector<8x128xf32>
    %20 = arith.truncf %19 : vector<8x128xf32> to vector<8x128xbf16>
    %c0_13 = arith.constant 0 : index
    %c0_14 = arith.constant 0 : index
    %21 = vector.load %arg6[%c0_13, %c0_14] : memref<128x128xbf16, #tpu.memory_space<vmem>>, vector<128x128xbf16>
    %cst_15 = arith.constant dense<0.000000e+00> : vector<8x128xf32>
    %22 = tpu.matmul %20, %21, %cst_15 {dimension_numbers = #tpu.dot_dimension_numbers<[1], [0], [0], [1], [0, 0, 1, 1], [], []>} : vector<8x128xbf16>, vector<128x128xbf16>, vector<8x128xf32> -> vector<8x128xf32>
    %c0_16 = arith.constant 0 : index
    %c0_17 = arith.constant 0 : index
    %23 = vector.load %arg7[%c0_16, %c0_17] : memref<1x128xf32, #tpu.memory_space<vmem>>, vector<1x128xf32>
    %24 = vector.broadcast %23 : vector<1x128xf32> to vector<8x128xf32>
    %25 = arith.addf %22, %24 : vector<8x128xf32>
    %c0_18 = arith.constant 0 : index
    %c0_19 = arith.constant 0 : index
    %26 = vector.load %arg8[%c0_18, %c0_19] : memref<8x128xf32, #tpu.memory_space<vmem>>, vector<8x128xf32>
    tpu.vector_store %arg8[%c0_18, %c0_19], %25 {strides = array<i32>} : memref<8x128xf32, #tpu.memory_space<vmem>>, vector<8x128xf32>,
    return
  }
  func.func @transform_0(%arg0: i32) -> (i32, i32) {
    %c0_i32 = arith.constant 0 : i32
    %c0_i32_0 = arith.constant 0 : i32
    return %arg0, %c0_i32 : i32, i32
  }
  func.func @transform_1(%arg0: i32) -> (i32, i32) {
    %c0_i32 = arith.constant 0 : i32
    %c0_i32_0 = arith.constant 0 : i32
    %c0_i32_1 = arith.constant 0 : i32
    return %c0_i32, %c0_i32_0 : i32, i32
  }
  func.func @transform_2(%arg0: i32) -> (i32, i32) {
    %c0_i32 = arith.constant 0 : i32
    %c0_i32_0 = arith.constant 0 : i32
    %c0_i32_1 = arith.constant 0 : i32
    return %c0_i32, %c0_i32_0 : i32, i32
  }
  func.func @transform_3(%arg0: i32) -> (i32, i32) {
    %c0_i32 = arith.constant 0 : i32
    %c0_i32_0 = arith.constant 0 : i32
    %c0_i32_1 = arith.constant 0 : i32
    return %c0_i32, %c0_i32_0 : i32, i32
  }
  func.func @transform_4(%arg0: i32) -> (i32, i32) {
    %c0_i32 = arith.constant 0 : i32
    %c0_i32_0 = arith.constant 0 : i32
    %c0_i32_1 = arith.constant 0 : i32
    return %c0_i32, %c0_i32_0 : i32, i32
  }
  func.func @transform_5(%arg0: i32) -> (i32, i32) {
    %c0_i32 = arith.constant 0 : i32
    %c0_i32_0 = arith.constant 0 : i32
    %c0_i32_1 = arith.constant 0 : i32
    return %c0_i32, %c0_i32_0 : i32, i32
  }
  func.func @transform_6(%arg0: i32) -> (i32, i32) {
    %c0_i32 = arith.constant 0 : i32
    %c0_i32_0 = arith.constant 0 : i32
    %c0_i32_1 = arith.constant 0 : i32
    return %c0_i32, %c0_i32_0 : i32, i32
  }
  func.func @transform_7(%arg0: i32) -> (i32, i32) {
    %c0_i32 = arith.constant 0 : i32
    %c0_i32_0 = arith.constant 0 : i32
    return %arg0, %c0_i32 : i32, i32
  }
}

</mosaic_0001>

<bundles_post_ra>
// kernel: tpu_custom_call.1
= control target key start
LH: loop header
LB: loop body
LE: loop exit
PB: predicated region body
PF: predicated region fallthrough
CT: control target
= control target key end

     0   :  { %12 = vsyncpa [#allocation3], 0  ;;  %s2959_s0 = inlined_call_operand.hbm [shape: bf16[128,256], index: 0, kind: input, shape index: {}]   ;;  %s2960_s1 = inlined_call_operand.hbm [shape: bf16[16,512], index: 1, kind: input, shape index: {}]   ;;  %s2961_s2 = inlined_call_operand.hbm [shape: bf16[256,512], index: 2, kind: input, shape index: {}]   ;;  %s2962_s3 = inlined_call_operand.hbm [shape: bf16[512,128], index: 3, kind: input, shape index: {}]   ;;  %s2963_s4 = inlined_call_operand.vmem [shape: f32[1,128], index: 4, kind: input, shape index: {}]   ;;  %s2964_s5 = inlined_call_operand.hbm [shape: bf16[128,128], index: 5, kind: input, shape index: {}]   ;;  %s2965_s6 = inlined_call_operand.vmem [shape: f32[1,128], index: 6, kind: input, shape index: {}]   ;;  %s2966_s7 = inlined_call_operand.hbm [shape: f32[8,128], index: 7, kind: output, shape index: {}]  }
   0x1   :  { %13 = vsyncpa [#allocation6], 0 }
   0x2   :  { %14 = vsyncpa [#allocation9], 0  ;;  %s33_s26 = sshll.u32 %s2960_s1, 4  ;;  %s34_s26 = int_to_ptr.hbm [resolvable:$true] %s33_s26 }
   0x3   :  { %15 = vsyncpa [#allocation4], 0  ;;  %s2661_s27 = smov [#allocation5]   ;;  %s59_s8 = sshll.u32 %s2962_s3, 4  ;;  %s60_s8 = int_to_ptr.hbm [resolvable:$true] %s59_s8 }
   0x4   :  { %s35_s28 = sshll.u32 %s2661_s27, 4  ;;  %s2662_s9 = smov 256   ;;  %s36_s28 = int_to_ptr.vmem [resolvable:$true] %s35_s28 }
   0x5   :  { %s2663_s10 = smov 16   ;;  %s2664_s11 = smov [#allocation8]  }
   0x6   :  { %41 = dma.hbm_to_vmem [thread:$0]  %s34_s26, 512, %s36_s28, [#allocation6], %s2662_s9, %s2662_s9, %s2663_s10  }
   0x7   :  { %s61_s12 = sshll.u32 %s2664_s11, 4  ;;  %s2665_s13 = smov 64   ;;  %s62_s12 = int_to_ptr.vmem [resolvable:$true] %s61_s12 }
   0x8   :  { %s2666_s14 = smov 4   ;;  %s20_s16 = sshll.u32 %s2959_s0, 4  ;;  %s21_s16 = int_to_ptr.hbm [resolvable:$true] %s20_s16 }
   0x9   :  { %67 = dma.hbm_to_vmem [thread:$0]  %s60_s8, 4096, %s62_s12, [#allocation9], %s2665_s13, %s2665_s13, %s2666_s14  }
   0xa   :  { %s2667_s17 = smov [#allocation2]   ;;  %s46_s20 = sshll.u32 %s2961_s2, 4  ;;  %s47_s20 = int_to_ptr.hbm [resolvable:$true] %s46_s20 }
   0xb   :  { %s22_s18 = sshll.u32 %s2667_s17, 4  ;;  %s2668_s21 = smov 128   ;;  %s23_s18 = int_to_ptr.vmem [resolvable:$true] %s22_s18 }
   0xc   :  { %s2669_s22 = smov 8   ;;  %s2670_s23 = smov [#allocation7]  }
   0xd   :  { %28 = dma.hbm_to_vmem [thread:$0]  %s21_s16, 2048, %s23_s18, [#allocation3], %s2668_s21, %s2668_s21, %s2669_s22  }
   0xe   :  { %s48_s24 = sshll.u32 %s2670_s23, 4  ;;  %s74_s27 = sshll.u32 %s2964_s5, 4  ;;  %s49_s24 = int_to_ptr.vmem [resolvable:$true] %s48_s24  ;;  %s75_s27 = int_to_ptr.hbm [resolvable:$true] %s74_s27 }
   0xf   :  { %54 = dma.hbm_to_vmem [thread:$0]  %s47_s20, 8192, %s49_s24, [#allocation6], %s2662_s9, %s2662_s9, %s2663_s10  }
  0x10   :  { %s2671_s0 = smov [#allocation10]  }
  0x11   :  { %s76_s28 = sshll.u32 %s2671_s0, 4  ;;  %s77_s28 = int_to_ptr.vmem [resolvable:$true] %s76_s28 }
  0x12   :  { %82 = dma.hbm_to_vmem [thread:$0]  %s75_s27, 1024, %s77_s28, [#allocation9], %s2665_s13, %s2665_s13, %s2666_s14  }
  0x13   :  { %2653 = dma.done.wait [#allocation3], 2048  }
  0x14   :  { %2654 = vsyncadd [#allocation3], 4294965248 }
  0x15   :  { %2655 = dma.done.wait [#allocation6], 8704  }
  0x16   :  { %2656 = vsyncadd [#allocation6], 4294958592 }
  0x17   :  { %2657 = dma.done.wait [#allocation9], 5120  }
  0x18   :  { %2658 = vsyncadd [#allocation9], 4294962176  ;;  %v2073_v0 = vld [vmem:[#allocation7 + $0xe0] sm:$0xf]  ;;  %v2421_v1 = vld [vmem:[#allocation7 + $0xec] sm:$0xf0] }
  0x19   :  { %v2201_v2 = vld [vmem:[#allocation7 + $0x1e0] sm:$0xf]  ;;  %v2074_v3 = vor.u32 %v2421_v1, %v2073_v0  ;;  %v2453_v4 = vld [vmem:[#allocation7 + $0x1ec] sm:$0xf0]  ;;  %v2419_v5 = vld [vmem:[#allocation7 + $0xe4] sm:$0xf] }
  0x1a   :  { %v2075_v6 = vld [vmem:[#allocation7 + $0xf0] sm:$0xf0]  ;;  %v2202_v7 = vor.u32 %v2453_v4, %v2201_v2  ;;  %v2451_v9 = vld [vmem:[#allocation7 + $0x1e4] sm:$0xf]  ;;  %v2057_v11 = vld [vmem:[#allocation7 + $0xc0] sm:$0xf] }
  0x1b   :  { %v2078_v8 = vor.u32 %v2419_v5, %v2075_v6  ;;  %v2203_v10 = vld [vmem:[#allocation7 + $0x1f0] sm:$0xf0]  ;;  %585 = vmatpush.bf16.msra.mxu0 %v2074_v3  ;;  %v2417_v13 = vld [vmem:[#allocation7 + $0xcc] sm:$0xf0]  ;;  %v2185_v14 = vld [vmem:[#allocation7 + $0x1c0] sm:$0xf] }
  0x1c   :  { %v2206_v12 = vor.u32 %v2451_v9, %v2203_v10  ;;  %v2449_v15 = vld [vmem:[#allocation7 + $0x1cc] sm:$0xf0]  ;;  %634 = vmatpush.bf16.msra.mxu1 %v2202_v7  ;;  %v2058_v16 = vor.u32 %v2417_v13, %v2057_v11  ;;  %v2415_v18 = vld [vmem:[#allocation7 + $0xc4] sm:$0xf]  ;;  %v2059_v19 = vld [vmem:[#allocation7 + $0xd0] sm:$0xf0] }
  0x1d   :  { %683 = vmatpush.bf16.msra.mxu2 %v2078_v8  ;;  %v2186_v17 = vor.u32 %v2449_v15, %v2185_v14  ;;  %v2447_v20 = vld [vmem:[#allocation7 + $0x1c4] sm:$0xf]  ;;  %v2062_v21 = vor.u32 %v2415_v18, %v2059_v19  ;;  %v2187_v22 = vld [vmem:[#allocation7 + $0x1d0] sm:$0xf0]  ;;  %v2041_v23 = vld [vmem:[#allocation7 + $0xa0] sm:$0xf] }
  0x1e   :  { %732 = vmatpush.bf16.msra.mxu3 %v2206_v12  ;;  %v2413_v24 = vld [vmem:[#allocation7 + $0xac] sm:$0xf0]  ;;  %v2190_v25 = vor.u32 %v2447_v20, %v2187_v22  ;;  %v2169_v26 = vld [vmem:[#allocation7 + $0x1a0] sm:$0xf]  ;;  %v2411_v28 = vld [vmem:[#allocation7 + $0xa4] sm:$0xf] }
  0x1f   :  { %v2445_v27 = vld [vmem:[#allocation7 + $0x1ac] sm:$0xf0]  ;;  %586 = vmatpush.bf16.msra.mxu0 %v2058_v16  ;;  %v2042_v29 = vor.u32 %v2413_v24, %v2041_v23  ;;  %v2043_v30 = vld [vmem:[#allocation7 + $0xb0] sm:$0xf0]  ;;  %v2443_v31 = vld [vmem:[#allocation7 + $0x1a4] sm:$0xf] }
  0x20   :  { %v2171_v32 = vld [vmem:[#allocation7 + $0x1b0] sm:$0xf0]  ;;  %635 = vmatpush.bf16.msra.mxu1 %v2186_v17  ;;  %v2170_v33 = vor.u32 %v2445_v27, %v2169_v26  ;;  %v2046_v34 = vor.u32 %v2411_v28, %v2043_v30  ;;  %v2025_v35 = vld [vmem:[#allocation7 + $0x80] sm:$0xf]  ;;  %v2409_v36 = vld [vmem:[#allocation7 + $0x8c] sm:$0xf0] }
  0x21   :  { %684 = vmatpush.bf16.msra.mxu2 %v2062_v21  ;;  %v2153_v37 = vld [vmem:[#allocation7 + $0x180] sm:$0xf]  ;;  %v2174_v38 = vor.u32 %v2443_v31, %v2171_v32  ;;  %v2441_v39 = vld [vmem:[#allocation7 + $0x18c] sm:$0xf0]  ;;  %v2407_v40 = vld [vmem:[#allocation7 + $0x84] sm:$0xf]  ;;  %v2026_v44 = vor.u32 %v2409_v36, %v2025_v35 }
  0x22   :  { %733 = vmatpush.bf16.msra.mxu3 %v2190_v25  ;;  %v2027_v41 = vld [vmem:[#allocation7 + $0x90] sm:$0xf0]  ;;  %v2439_v42 = vld [vmem:[#allocation7 + $0x184] sm:$0xf]  ;;  %v2154_v45 = vor.u32 %v2441_v39, %v2153_v37  ;;  %v2009_v47 = vld [vmem:[#allocation7 + $0x60] sm:$0xf] }
  0x23   :  { %v2155_v43 = vld [vmem:[#allocation7 + $0x190] sm:$0xf0]  ;;  %587 = vmatpush.bf16.msra.mxu0 %v2042_v29  ;;  %v2030_v46 = vor.u32 %v2407_v40, %v2027_v41  ;;  %v2405_v48 = vld [vmem:[#allocation7 + $0x6c] sm:$0xf0]  ;;  %v2137_v49 = vld [vmem:[#allocation7 + $0x160] sm:$0xf] }
  0x24   :  { %636 = vmatpush.bf16.msra.mxu1 %v2170_v33  ;;  %v2158_v50 = vor.u32 %v2439_v42, %v2155_v43  ;;  %v2437_v51 = vld [vmem:[#allocation7 + $0x16c] sm:$0xf0]  ;;  %v2403_v52 = vld [vmem:[#allocation7 + $0x64] sm:$0xf]  ;;  %v2011_v53 = vld [vmem:[#allocation7 + $0x70] sm:$0xf0]  ;;  %v2010_v56 = vor.u32 %v2405_v48, %v2009_v47 }
  0x25   :  { %685 = vmatpush.bf16.msra.mxu2 %v2046_v34  ;;  %v2435_v54 = vld [vmem:[#allocation7 + $0x164] sm:$0xf]  ;;  %v2139_v55 = vld [vmem:[#allocation7 + $0x170] sm:$0xf0]  ;;  %v2138_v57 = vor.u32 %v2437_v51, %v2137_v49  ;;  %v2014_v58 = vor.u32 %v2403_v52, %v2011_v53  ;;  %v1993_v59 = vld [vmem:[#allocation7 + $0x40] sm:$0xf] }
  0x26   :  { %734 = vmatpush.bf16.msra.mxu3 %v2174_v38  ;;  %v2401_v60 = vld [vmem:[#allocation7 + $0x4c] sm:$0xf0]  ;;  %v2121_v61 = vld [vmem:[#allocation7 + $0x140] sm:$0xf]  ;;  %v2142_v62 = vor.u32 %v2435_v54, %v2139_v55  ;;  %v2399_v0 = vld [vmem:[#allocation7 + $0x44] sm:$0xf] }
  0x27   :  { %588 = vmatpush.bf16.msra.mxu0 %v2026_v44  ;;  %v2433_v63 = vld [vmem:[#allocation7 + $0x14c] sm:$0xf0]  ;;  %v1995_v1 = vld [vmem:[#allocation7 + $0x50] sm:$0xf0]  ;;  %v2431_v2 = vld [vmem:[#allocation7 + $0x144] sm:$0xf]  ;;  %v1994_v4 = vor.u32 %v2401_v60, %v1993_v59 }
  0x28   :  { %637 = vmatpush.bf16.msra.mxu1 %v2154_v45  ;;  %v2123_v3 = vld [vmem:[#allocation7 + $0x150] sm:$0xf0]  ;;  %v2122_v5 = vor.u32 %v2433_v63, %v2121_v61  ;;  %v1998_v6 = vor.u32 %v2399_v0, %v1995_v1  ;;  %v1977_v7 = vld [vmem:[#allocation7 + $0x20] sm:$0xf]  ;;  %v2397_v8 = vld [vmem:[#allocation7 + $0x2c] sm:$0xf0] }
  0x29   :  { %686 = vmatpush.bf16.msra.mxu2 %v2030_v46  ;;  %v2105_v9 = vld [vmem:[#allocation7 + $0x120] sm:$0xf]  ;;  %v2126_v10 = vor.u32 %v2431_v2, %v2123_v3  ;;  %v2429_v11 = vld [vmem:[#allocation7 + $0x12c] sm:$0xf0]  ;;  %v2395_v12 = vld [vmem:[#allocation7 + $0x24] sm:$0xf]  ;;  %v1978_v16 = vor.u32 %v2397_v8, %v1977_v7 }
  0x2a   :  { %735 = vmatpush.bf16.msra.mxu3 %v2158_v50  ;;  %v1979_v13 = vld [vmem:[#allocation7 + $0x30] sm:$0xf0]  ;;  %v2427_v14 = vld [vmem:[#allocation7 + $0x124] sm:$0xf]  ;;  %v1961_v17 = vld [vmem:[#allocation7] sm:$0xf]  ;;  %v2106_v20 = vor.u32 %v2429_v11, %v2105_v9 }
  0x2b   :  { %589 = vmatpush.bf16.msra.mxu0 %v2010_v56  ;;  %v2107_v15 = vld [vmem:[#allocation7 + $0x130] sm:$0xf0]  ;;  %v2393_v18 = vld [vmem:[#allocation7 + $0xc] sm:$0xf0]  ;;  %v2089_v19 = vld [vmem:[#allocation7 + $0x100] sm:$0xf]  ;;  %v1982_v21 = vor.u32 %v2395_v12, %v1979_v13 }
  0x2c   :  { %638 = vmatpush.bf16.msra.mxu1 %v2138_v57  ;;  %v2425_v22 = vld [vmem:[#allocation7 + $0x10c] sm:$0xf0]  ;;  %v2391_v23 = vld [vmem:[#allocation7 + $0x4] sm:$0xf]  ;;  %v1963_v24 = vld [vmem:[#allocation7 + $0x10] sm:$0xf0]  ;;  %v2110_v25 = vor.u32 %v2427_v14, %v2107_v15  ;;  %v1962_v32 = vor.u32 %v2393_v18, %v1961_v17 }
  0x2d   :  { %687 = vmatpush.bf16.msra.mxu2 %v2014_v58  ;;  %v2423_v26 = vld [vmem:[#allocation7 + $0x104] sm:$0xf]  ;;  %v2091_v27 = vld [vmem:[#allocation7 + $0x110] sm:$0xf0]  ;;  %v1897_v28 = vld [vmem:[#allocation2] sm:$0xf]  ;;  %v2090_v36 = vor.u32 %v2425_v22, %v2089_v19  ;;  %v1966_v37 = vor.u32 %v2391_v23, %v1963_v24 }
  0x2e   :  { %736 = vmatpush.bf16.msra.mxu3 %v2142_v62  ;;  %v2376_v29 = vld [vmem:[#allocation2 + $0x4] sm:$0xf0]  ;;  %v2420_v30 = vld [vmem:[#allocation7 + $0xec] sm:$0xf]  ;;  %v2083_v31 = vld [vmem:[#allocation7 + $0xf8] sm:$0xf0]  ;;  %v2094_v41 = vor.u32 %v2423_v26, %v2091_v27 }
  0x2f   :  { %590 = vmatpush.bf16.msra.mxu0 %v1994_v4  ;;  %v2375_v33 = vld [vmem:[#allocation2 + $0x4] sm:$0xf]  ;;  %v2452_v34 = vld [vmem:[#allocation7 + $0x1ec] sm:$0xf]  ;;  %v2211_v35 = vld [vmem:[#allocation7 + $0x1f8] sm:$0xf0]  ;;  %v2086_v42 = vor.u32 %v2420_v30, %v2083_v31  ;;  %v2728_v46 = vor.u32 %v2376_v29, %v1897_v28 }
  0x30   :  { %639 = vmatpush.bf16.msra.mxu1 %v2122_v5  ;;  %v1899_v38 = vld [vmem:[#allocation2 + $0x8] sm:$0xf0]  ;;  %v2081_v39 = vld [vmem:[#allocation7 + $0xe8] sm:$0xf]  ;;  %v2422_v40 = vld [vmem:[#allocation7 + $0xf4] sm:$0xf0]  ;;  %v2214_v47 = vor.u32 %v2452_v34, %v2211_v35 }
  0x31   :  { %688 = vmatpush.bf16.msra.mxu2 %v1998_v6  ;;  %v2209_v43 = vld [vmem:[#allocation7 + $0x1e8] sm:$0xf]  ;;  %v2454_v44 = vld [vmem:[#allocation7 + $0x1f4] sm:$0xf0]  ;;  %v2416_v45 = vld [vmem:[#allocation7 + $0xcc] sm:$0xf]  ;;  %v2730_v49 = vor.u32 %v2375_v33, %v1899_v38  ;;  %v2082_v52 = vor.u32 %v2422_v40, %v2081_v39 }
  0x32   :  { %737 = vmatpush.bf16.msra.mxu3 %v2126_v10  ;;  %v2067_v48 = vld [vmem:[#allocation7 + $0xd8] sm:$0xf0]  ;;  %v2448_v50 = vld [vmem:[#allocation7 + $0x1cc] sm:$0xf]  ;;  %v2210_v53 = vor.u32 %v2454_v44, %v2209_v43  ;;  %v2065_v55 = vld [vmem:[#allocation7 + $0xc8] sm:$0xf] }
  0x33   :  { %591 = vmatpush.bf16.msra.mxu0 %v1978_v16  ;;  %v2195_v51 = vld [vmem:[#allocation7 + $0x1d8] sm:$0xf0]  ;;  %v2070_v54 = vor.u32 %v2416_v45, %v2067_v48  ;;  %v2418_v56 = vld [vmem:[#allocation7 + $0xd4] sm:$0xf0]  ;;  %v2193_v58 = vld [vmem:[#allocation7 + $0x1c8] sm:$0xf] }
  0x34   :  { %640 = vmatpush.bf16.msra.mxu1 %v2106_v20  ;;  %v2198_v57 = vor.u32 %v2448_v50, %v2195_v51  ;;  %v2450_v59 = vld [vmem:[#allocation7 + $0x1d4] sm:$0xf0]  ;;  %v2066_v60 = vor.u32 %v2418_v56, %v2065_v55  ;;  %v2412_v61 = vld [vmem:[#allocation7 + $0xac] sm:$0xf]  ;;  %v2051_v62 = vld [vmem:[#allocation7 + $0xb8] sm:$0xf0] }
  0x35   :  { %689 = vmatpush.bf16.msra.mxu2 %v1982_v21  ;;  %v2444_v63 = vld [vmem:[#allocation7 + $0x1ac] sm:$0xf]  ;;  %v2194_v0 = vor.u32 %v2450_v59, %v2193_v58  ;;  %v2054_v1 = vor.u32 %v2412_v61, %v2051_v62  ;;  %v2179_v2 = vld [vmem:[#allocation7 + $0x1b8] sm:$0xf0]  ;;  %v2049_v3 = vld [vmem:[#allocation7 + $0xa8] sm:$0xf] }
  0x36   :  { %738 = vmatpush.bf16.msra.mxu3 %v2110_v25  ;;  %v2414_v4 = vld [vmem:[#allocation7 + $0xb4] sm:$0xf0]  ;;  %v2182_v5 = vor.u32 %v2444_v63, %v2179_v2  ;;  %v2177_v6 = vld [vmem:[#allocation7 + $0x1a8] sm:$0xf]  ;;  %v1905_v10 = vld [vmem:[#allocation2 + $0x10] sm:$0xf] }
  0x37   :  { %592 = vmatpush.bf16.msra.mxu0 %v1962_v32  ;;  %v2446_v7 = vld [vmem:[#allocation7 + $0x1b4] sm:$0xf0]  ;;  %v2050_v8 = vor.u32 %v2414_v4, %v2049_v3  ;;  %v2377_v12 = vld [vmem:[#allocation2 + $0x14] sm:$0xf]  ;;  %v1907_v13 = vld [vmem:[#allocation2 + $0x18] sm:$0xf0] }
  0x38   :  { %641 = vmatpush.bf16.msra.mxu1 %v2090_v36  ;;  %v2178_v9 = vor.u32 %v2446_v7, %v2177_v6  ;;  %v2378_v11 = vld [vmem:[#allocation2 + $0x14] sm:$0xf0]  ;;  %v2738_v15 = vor.u32 %v2377_v12, %v1907_v13  ;;  %v2408_v16 = vld [vmem:[#allocation7 + $0x8c] sm:$0xf]  ;;  %v2035_v17 = vld [vmem:[#allocation7 + $0x98] sm:$0xf0] }
  0x39   :  { %690 = vmatpush.bf16.msra.mxu2 %v1966_v37  ;;  %v2736_v14 = vor.u32 %v2378_v11, %v1905_v10  ;;  %v2440_v18 = vld [vmem:[#allocation7 + $0x18c] sm:$0xf]  ;;  %v2038_v19 = vor.u32 %v2408_v16, %v2035_v17  ;;  %v2163_v20 = vld [vmem:[#allocation7 + $0x198] sm:$0xf0]  ;;  %v2033_v21 = vld [vmem:[#allocation7 + $0x88] sm:$0xf] }
  0x3a   :  { %739 = vmatpush.bf16.msra.mxu3 %v2094_v41  ;;  %593 = vmatmul.bf16.vlgmr.msra.gmra.mxu0 %v2728_v46  ;;  %v2410_v22 = vld [vmem:[#allocation7 + $0x94] sm:$0xf0]  ;;  %v2166_v23 = vor.u32 %v2440_v18, %v2163_v20  ;;  %v2161_v25 = vld [vmem:[#allocation7 + $0x188] sm:$0xf]  ;;  %v1913_v28 = vld [vmem:[#allocation2 + $0x20] sm:$0xf] }
  0x3b   :  { %642 = vmatmul.bf16.vlgmr.msra.gmra.mxu1 %v2730_v49  ;;  %781 = vmatpush.bf16.msrb.mxu0 %v2082_v52  ;;  %v2034_v24 = vor.u32 %v2410_v22, %v2033_v21  ;;  %v2442_v26 = vld [vmem:[#allocation7 + $0x194] sm:$0xf0]  ;;  %v2380_v29 = vld [vmem:[#allocation2 + $0x24] sm:$0xf0]  ;;  %v2379_v30 = vld [vmem:[#allocation2 + $0x24] sm:$0xf] }
  0x3c   :  { %691 = vmatmul.bf16.vlgmr.msra.gmra.mxu2 %v2728_v46  ;;  %830 = vmatpush.bf16.msrb.mxu1 %v2210_v53  ;;  %v2162_v27 = vor.u32 %v2442_v26, %v2161_v25  ;;  %v1915_v31 = vld [vmem:[#allocation2 + $0x28] sm:$0xf0]  ;;  %v2744_v32 = vor.u32 %v2380_v29, %v1913_v28  ;;  %v2019_v35 = vld [vmem:[#allocation7 + $0x78] sm:$0xf0]  ;;  %v2017_v39 = vld [vmem:[#allocation7 + $0x68] sm:$0xf] }
  0x3d   :  { %879 = vmatpush.bf16.msrb.mxu2 %v2086_v42  ;;  %740 = vmatmul.bf16.vlgmr.msra.gmra.mxu3 %v2730_v49  ;;  %v2746_v33 = vor.u32 %v2379_v30, %v1915_v31  ;;  %v2404_v34 = vld [vmem:[#allocation7 + $0x6c] sm:$0xf]  ;;  %v2147_v38 = vld [vmem:[#allocation7 + $0x178] sm:$0xf0]  ;;  %v2406_v40 = vld [vmem:[#allocation7 + $0x74] sm:$0xf0] }
  0x3e   :  { %928 = vmatpush.bf16.msrb.mxu3 %v2214_v47  ;;  %v2436_v36 = vld [vmem:[#allocation7 + $0x16c] sm:$0xf]  ;;  %v2022_v37 = vor.u32 %v2404_v34, %v2019_v35  ;;  %v2018_v42 = vor.u32 %v2406_v40, %v2017_v39  ;;  %v2145_v43 = vld [vmem:[#allocation7 + $0x168] sm:$0xf]  ;;  %v2438_v44 = vld [vmem:[#allocation7 + $0x174] sm:$0xf0] }
  0x3f   :  { %782 = vmatpush.bf16.msrb.mxu0 %v2066_v60  ;;  %v2150_v41 = vor.u32 %v2436_v36, %v2147_v38  ;;  %v2146_v45 = vor.u32 %v2438_v44, %v2145_v43  ;;  %v1921_v47 = vld [vmem:[#allocation2 + $0x30] sm:$0xf]  ;;  %v2382_v48 = vld [vmem:[#allocation2 + $0x34] sm:$0xf0]  ;;  %v2381_v50 = vld [vmem:[#allocation2 + $0x34] sm:$0xf] }
  0x40   :  { %831 = vmatpush.bf16.msrb.mxu1 %v2194_v0  ;;  %v1923_v51 = vld [vmem:[#allocation2 + $0x38] sm:$0xf0]  ;;  %v2752_v52 = vor.u32 %v2382_v48, %v1921_v47  ;;  %v2432_v56 = vld [vmem:[#allocation7 + $0x14c] sm:$0xf]  ;;  %v2001_v59 = vld [vmem:[#allocation7 + $0x48] sm:$0xf] }
  0x41   :  { %880 = vmatpush.bf16.msrb.mxu2 %v2070_v54  ;;  %v2754_v53 = vor.u32 %v2381_v50, %v1923_v51  ;;  %v2400_v54 = vld [vmem:[#allocation7 + $0x4c] sm:$0xf]  ;;  %v2003_v55 = vld [vmem:[#allocation7 + $0x58] sm:$0xf0]  ;;  %v2402_v60 = vld [vmem:[#allocation7 + $0x54] sm:$0xf0] }
  0x42   :  { %929 = vmatpush.bf16.msrb.mxu3 %v2198_v57  ;;  %v2006_v57 = vor.u32 %v2400_v54, %v2003_v55  ;;  %v2131_v58 = vld [vmem:[#allocation7 + $0x158] sm:$0xf0]  ;;  %v2002_v62 = vor.u32 %v2402_v60, %v2001_v59  ;;  %v2129_v63 = vld [vmem:[#allocation7 + $0x148] sm:$0xf]  ;;  %v2434_v0 = vld [vmem:[#allocation7 + $0x154] sm:$0xf0] }
  0x43   :  { %783 = vmatpush.bf16.msrb.mxu0 %v2050_v8  ;;  %v2134_v61 = vor.u32 %v2432_v56, %v2131_v58  ;;  %v1929_v2 = vld [vmem:[#allocation2 + $0x40] sm:$0xf]  ;;  %v2384_v3 = vld [vmem:[#allocation2 + $0x44] sm:$0xf0]  ;;  %v2383_v4 = vld [vmem:[#allocation2 + $0x44] sm:$0xf] }
  0x44   :  { %832 = vmatpush.bf16.msrb.mxu1 %v2178_v9  ;;  %v2760_v6 = vor.u32 %v2384_v3, %v1929_v2  ;;  %v2396_v8 = vld [vmem:[#allocation7 + $0x2c] sm:$0xf]  ;;  %v1987_v9 = vld [vmem:[#allocation7 + $0x38] sm:$0xf0]  ;;  %v1985_v13 = vld [vmem:[#allocation7 + $0x28] sm:$0xf] }
  0x45   :  { %881 = vmatpush.bf16.msrb.mxu2 %v2054_v1  ;;  %v2130_v1 = vor.u32 %v2434_v0, %v2129_v63  ;;  %v2428_v10 = vld [vmem:[#allocation7 + $0x12c] sm:$0xf]  ;;  %v1990_v11 = vor.u32 %v2396_v8, %v1987_v9  ;;  %v2115_v12 = vld [vmem:[#allocation7 + $0x138] sm:$0xf0]  ;;  %v2398_v16 = vld [vmem:[#allocation7 + $0x34] sm:$0xf0] }
  0x46   :  { %930 = vmatpush.bf16.msrb.mxu3 %v2182_v5  ;;  %v1931_v5 = vld [vmem:[#allocation2 + $0x48] sm:$0xf0]  ;;  %v2118_v17 = vor.u32 %v2428_v10, %v2115_v12  ;;  %v1986_v18 = vor.u32 %v2398_v16, %v1985_v13  ;;  %v2430_v20 = vld [vmem:[#allocation7 + $0x134] sm:$0xf0]  ;;  %v1937_v22 = vld [vmem:[#allocation2 + $0x50] sm:$0xf] }
  0x47   :  { %784 = vmatpush.bf16.msrb.mxu0 %v2034_v24  ;;  %v2762_v7 = vor.u32 %v2383_v4, %v1931_v5  ;;  %v2385_v24 = vld [vmem:[#allocation2 + $0x54] sm:$0xf]  ;;  %v1939_v25 = vld [vmem:[#allocation2 + $0x58] sm:$0xf0]  ;;  %v2392_v28 = vld [vmem:[#allocation7 + $0xc] sm:$0xf] }
  0x48   :  { %833 = vmatpush.bf16.msrb.mxu1 %v2162_v27  ;;  %v2770_v27 = vor.u32 %v2385_v24, %v1939_v25  ;;  %v1971_v29 = vld [vmem:[#allocation7 + $0x18] sm:$0xf0]  ;;  %v2424_v30 = vld [vmem:[#allocation7 + $0x10c] sm:$0xf]  ;;  %v1969_v35 = vld [vmem:[#allocation7 + $0x8] sm:$0xf] }
  0x49   :  { %882 = vmatpush.bf16.msrb.mxu2 %v2038_v19  ;;  %v2113_v19 = vld [vmem:[#allocation7 + $0x128] sm:$0xf]  ;;  %v1974_v31 = vor.u32 %v2392_v28, %v1971_v29  ;;  %v2099_v34 = vld [vmem:[#allocation7 + $0x118] sm:$0xf0]  ;;  %v2394_v36 = vld [vmem:[#allocation7 + $0x14] sm:$0xf0] }
  0x4a   :  { %598 = vmatmul.bf16.gmra.mxu0 %v2736_v14  ;;  %931 = vmatpush.bf16.msrb.mxu3 %v2166_v23  ;;  %v2114_v21 = vor.u32 %v2430_v20, %v2113_v19  ;;  %v2386_v23 = vld [vmem:[#allocation2 + $0x54] sm:$0xf0]  ;;  %v1970_v38 = vor.u32 %v2394_v36, %v1969_v35  ;;  %v2097_v39 = vld [vmem:[#allocation7 + $0x108] sm:$0xf]  ;;  %v2387_v44 = vld [vmem:[#allocation2 + $0x64] sm:$0xf] }
  0x4b   :  { %647 = vmatmul.bf16.gmra.mxu1 %v2738_v15  ;;  %785 = vmatpush.bf16.msrb.mxu0 %v2018_v42  ;;  %v2768_v26 = vor.u32 %v2386_v23, %v1937_v22  ;;  %v2426_v40 = vld [vmem:[#allocation7 + $0x114] sm:$0xf0]  ;;  %v1945_v42 = vld [vmem:[#allocation2 + $0x60] sm:$0xf]  ;;  %v2388_v43 = vld [vmem:[#allocation2 + $0x64] sm:$0xf0] }
  0x4c   :  { %696 = vmatmul.bf16.gmra.mxu2 %v2736_v14  ;;  %834 = vmatpush.bf16.msrb.mxu1 %v2146_v45  ;;  %v1947_v45 = vld [vmem:[#allocation2 + $0x68] sm:$0xf0]  ;;  %v2776_v47 = vor.u32 %v2388_v43, %v1945_v42  ;;  %v1953_v50 = vld [vmem:[#allocation2 + $0x70] sm:$0xf]  ;;  %v2390_v51 = vld [vmem:[#allocation2 + $0x74] sm:$0xf0] }
  0x4d   :  { %745 = vmatmul.bf16.gmra.mxu3 %v2738_v15  ;;  %883 = vmatpush.bf16.msrb.mxu2 %v2022_v37  ;;  %v2102_v37 = vor.u32 %v2424_v30, %v2099_v34  ;;  %v2778_v48 = vor.u32 %v2387_v44, %v1947_v45  ;;  %v2389_v54 = vld [vmem:[#allocation2 + $0x74] sm:$0xf]  ;;  %v1955_v55 = vld [vmem:[#allocation2 + $0x78] sm:$0xf0]  ;;  %v2784_v56 = vor.u32 %v2390_v51, %v1953_v50  ;;  %vm1505_vm0 = vcmask 1041409   ;;  %s2672_s30 = smov [#allocation11]  }
  0x4e   :  { %932 = vmatpush.bf16.msrb.mxu3 %v2150_v41  ;;  %v2098_v41 = vor.u32 %v2426_v40, %v2097_v39  ;;  %v1043_v63 = vld [vmem:[#allocation5 + $0x10] sm:$0xff]  ;;  %vm1507_vm1 = vcmask 1042434   ;;  %vm1509_vm2 = vcmask 1043459   ;;  %vm1511_vm3 = vcmask 1044484   ;;  %s1881_s8 = sshll.u32 %s2672_s30, 4  ;;  %s1883_s11 = sshll.u32 %s2966_s7, 4  ;;  %s1882_s8 = int_to_ptr.vmem [resolvable:$true] %s1881_s8  ;;  %s1884_s11 = int_to_ptr.hbm [resolvable:$true] %s1883_s11 }
  0x4f   :  { %786 = vmatpush.bf16.msrb.mxu0 %v2002_v62  ;;  %v2798_v9 = vunpack.c.l.bf16 %v1043_v63  ;;  %v2804_v20 = vunpack.c.h.bf16 %v1043_v63  ;;  %vm1513_vm4 = vcmask 1045509   ;;  %vm1515_vm5 = vcmask 1046534  }
  0x50   :  { %835 = vmatpush.bf16.msrb.mxu1 %v2130_v1  ;;  %vm1517_vm6 = vcmask 1047559  }
  0x51   :  { %884 = vmatpush.bf16.msrb.mxu2 %v2006_v57  ;;  %v2786_v57 = vor.u32 %v2389_v54, %v1955_v55 }
  0x52   :  { %933 = vmatpush.bf16.msrb.mxu3 %v2134_v61  ;;  %v1041_v61 = vld [vmem:[#allocation5] sm:$0xff] }
  0x53   :  { %787 = vmatpush.bf16.msrb.mxu0 %v1986_v18  ;;  %v2796_v5 = vunpack.c.l.bf16 %v1041_v61  ;;  %v2802_v18 = vunpack.c.h.bf16 %v1041_v61 }
  0x54   :  { %836 = vmatpush.bf16.msrb.mxu1 %v2114_v21 }
  0x55   :  { %885 = vmatpush.bf16.msrb.mxu2 %v1990_v11 }
  0x56   :  { %934 = vmatpush.bf16.msrb.mxu3 %v2118_v17 }
  0x57   :  { %788 = vmatpush.bf16.msrb.mxu0 %v1970_v38 }
  0x58   :  { %837 = vmatpush.bf16.msrb.mxu1 %v2098_v41 }
  0x59   :  { %886 = vmatpush.bf16.msrb.mxu2 %v1974_v31 }
  0x5a   :  { %603 = vmatmul.bf16.gmra.mxu0 %v2744_v32  ;;  %935 = vmatpush.bf16.msrb.mxu3 %v2102_v37 }
  0x5b   :  { %652 = vmatmul.bf16.gmra.mxu1 %v2746_v33 }
  0x5c   :  { %701 = vmatmul.bf16.gmra.mxu2 %v2744_v32 }
  0x5d   :  { %750 = vmatmul.bf16.gmra.mxu3 %v2746_v33 }
  0x6a   :  { %608 = vmatmul.bf16.gmra.mxu0 %v2752_v52 }
  0x6b   :  { %657 = vmatmul.bf16.gmra.mxu1 %v2754_v53 }
  0x6c   :  { %706 = vmatmul.bf16.gmra.mxu2 %v2752_v52 }
  0x6d   :  { %755 = vmatmul.bf16.gmra.mxu3 %v2754_v53 }
  0x7a   :  { %613 = vmatmul.bf16.gmra.mxu0 %v2760_v6 }
  0x7b   :  { %662 = vmatmul.bf16.gmra.mxu1 %v2762_v7 }
  0x7c   :  { %711 = vmatmul.bf16.gmra.mxu2 %v2760_v6 }
  0x7d   :  { %760 = vmatmul.bf16.gmra.mxu3 %v2762_v7 }
  0x8a   :  { %618 = vmatmul.bf16.gmra.mxu0 %v2768_v26 }
  0x8b   :  { %667 = vmatmul.bf16.gmra.mxu1 %v2770_v27 }
  0x8c   :  { %716 = vmatmul.bf16.gmra.mxu2 %v2768_v26 }
  0x8d   :  { %765 = vmatmul.bf16.gmra.mxu3 %v2770_v27 }
  0x9a   :  { %623 = vmatmul.bf16.gmra.mxu0 %v2776_v47 }
  0x9b   :  { %672 = vmatmul.bf16.gmra.mxu1 %v2778_v48 }
  0x9c   :  { %721 = vmatmul.bf16.gmra.mxu2 %v2776_v47 }
  0x9d   :  { %770 = vmatmul.bf16.gmra.mxu3 %v2778_v48 }
  0xaa   :  { %628 = vmatmul.bf16.gmra.mxu0 %v2784_v56 }
  0xab   :  { %677 = vmatmul.bf16.gmra.mxu1 %v2786_v57 }
  0xac   :  { %726 = vmatmul.bf16.gmra.mxu2 %v2784_v56 }
  0xad   :  { %775 = vmatmul.bf16.gmra.mxu3 %v2786_v57 }
  0xb7   :  { %v594_v58 = vpop.f32.mrf.mxu0 }
  0xb8   :  { %v643_v59 = vpop.f32.mrf.mxu1 }
  0xb9   :  { %v644_v60 = vadd.f32 %v643_v59, %v594_v58 }
  0xba   :  { %789 = vmatmul.bf16.vlgmr.msrb.gmra.mxu0 %v2728_v46 }
  0xbb   :  { %838 = vmatmul.bf16.vlgmr.msrb.gmra.mxu1 %v2730_v49  ;;  %v977_v4 = vmax.f32 %v644_v60, 0.0 }
  0xbc   :  { %887 = vmatmul.bf16.vlgmr.msrb.gmra.mxu2 %v2728_v46 }
  0xbd   :  { %936 = vmatmul.bf16.vlgmr.msrb.gmra.mxu3 %v2730_v49  ;;  %v1053_v11 = vmul.f32 %v2796_v5, %v977_v4 }
  0xbf   :  { %v692_v62 = vpop.f32.mrf.mxu2  ;;  %v596_v1 = vpop.f32.mrf.mxu0 }
  0xc0   :  { %v741_v0 = vpop.f32.mrf.mxu3  ;;  %v645_v3 = vpop.f32.mrf.mxu1 }
  0xc1   :  { %v742_v2 = vadd.f32 %v741_v0, %v692_v62  ;;  %v646_v8 = vadd.f32 %v645_v3, %v596_v1 }
  0xc3   :  { %v981_v10 = vmax.f32 %v646_v8, 0.0  ;;  %v978_v17 = vmax.f32 %v742_v2, 0.0 }
  0xc5   :  { %v1057_v46 = vmul.f32 %v2798_v9, %v981_v10  ;;  %v1054_v25 = vmul.f32 %v2802_v18, %v978_v17 }
  0xc7   :  { %v694_v12 = vpop.f32.mrf.mxu2  ;;  %v1117_v49 = vmax.f32 %v1053_v11, %v1057_v46  ;;  %v599_v16 = vpop.f32.mrf.mxu0 }
  0xc8   :  { %v743_v13 = vpop.f32.mrf.mxu3  ;;  %v648_v21 = vpop.f32.mrf.mxu1 }
  0xc9   :  { %v744_v19 = vadd.f32 %v743_v13, %v694_v12  ;;  %v649_v22 = vadd.f32 %v648_v21, %v599_v16  ;;  %v1118_v24 = vrot.slane %v1117_v49, 4 }
  0xca   :  { %794 = vmatmul.bf16.gmra.mxu0 %v2736_v14 }
  0xcb   :  { %v982_v23 = vmax.f32 %v744_v19, 0.0  ;;  %843 = vmatmul.bf16.gmra.mxu1 %v2738_v15  ;;  %v1119_v31 = vmax.f32 %v1117_v49, %v1118_v24  ;;  %v985_v38 = vmax.f32 %v649_v22, 0.0 }
  0xcc   :  { %892 = vmatmul.bf16.gmra.mxu2 %v2736_v14 }
  0xcd   :  { %v1058_v28 = vmul.f32 %v2804_v20, %v982_v23  ;;  %941 = vmatmul.bf16.gmra.mxu3 %v2738_v15  ;;  %v1120_v41 = vrot.slane %v1119_v31, 2  ;;  %v1061_v14 = vmul.f32 %v2796_v5, %v985_v38 }
  0xcf   :  { %v1124_v29 = vmax.f32 %v1054_v25, %v1058_v28  ;;  %v697_v30 = vpop.f32.mrf.mxu2  ;;  %v601_v35 = vpop.f32.mrf.mxu0  ;;  %v1121_v50 = vmax.f32 %v1119_v31, %v1120_v41 }
  0xd0   :  { %v746_v34 = vpop.f32.mrf.mxu3  ;;  %v650_v37 = vpop.f32.mrf.mxu1 }
  0xd1   :  { %v747_v36 = vadd.f32 %v746_v34, %v697_v30  ;;  %v651_v39 = vadd.f32 %v650_v37, %v601_v35  ;;  %v1125_v40 = vrot.slane %v1124_v29, 4  ;;  %v1122_v0 = vrot.slane %v1121_v50, 1 }
  0xd3   :  { %v989_v42 = vmax.f32 %v651_v39, 0.0  ;;  %v1126_v44 = vmax.f32 %v1124_v29, %v1125_v40  ;;  %v986_v55 = vmax.f32 %v747_v36, 0.0  ;;  %v1123_v46 = vmax.f32 %v1121_v50, %v1122_v0 }
  0xd5   :  { %v1065_v43 = vmul.f32 %v2798_v9, %v989_v42  ;;  %v1127_v62 = vrot.slane %v1126_v44, 2  ;;  %v1062_v2 = vmul.f32 %v2802_v18, %v986_v55  ;;  %v1341_v25 = vpack.c.bf16 %v1123_v46, %v1123_v46 }
  0xd7   :  { %v699_v45 = vpop.f32.mrf.mxu2  ;;  %v1145_v15 = vmax.f32 %v1061_v14, %v1065_v43  ;;  %v604_v54 = vpop.f32.mrf.mxu0  ;;  %v1128_v8 = vmax.f32 %v1126_v44, %v1127_v62  ;;  %v1473_v38 = vunpack.c.l.b16 %v1341_v25 }
  0xd8   :  { %v748_v51 = vpop.f32.mrf.mxu3  ;;  %v653_v59 = vpop.f32.mrf.mxu1 }
  0xd9   :  { %v749_v58 = vadd.f32 %v748_v51, %v699_v45  ;;  %v1146_v60 = vrot.slane %v1145_v15, 4  ;;  %v654_v61 = vadd.f32 %v653_v59, %v604_v54  ;;  %v1129_v23 = vrot.slane %v1128_v8, 1 }
  0xda   :  { %799 = vmatmul.bf16.gmra.mxu0 %v2744_v32 }
  0xdb   :  { %v990_v63 = vmax.f32 %v749_v58, 0.0  ;;  %v1147_v1 = vmax.f32 %v1145_v15, %v1146_v60  ;;  %848 = vmatmul.bf16.gmra.mxu1 %v2746_v33  ;;  %v993_v22 = vmax.f32 %v654_v61, 0.0  ;;  %v1130_v35 = vmax.f32 %v1128_v8, %v1129_v23 }
  0xdc   :  { %897 = vmatmul.bf16.gmra.mxu2 %v2744_v32 }
  0xdd   :  { %v1066_v3 = vmul.f32 %v2804_v20, %v990_v63  ;;  %946 = vmatmul.bf16.gmra.mxu3 %v2746_v33  ;;  %v1148_v4 = vrot.slane %v1147_v1, 2  ;;  %v1069_v31 = vmul.f32 %v2796_v5, %v993_v22  ;;  %v1342_v54 = vpack.c.bf16 %v1130_v35, %v1130_v35 }
  0xdf   :  { %v1152_v10 = vmax.f32 %v1062_v2, %v1066_v3  ;;  %v702_v11 = vpop.f32.mrf.mxu2  ;;  %v1149_v12 = vmax.f32 %v1147_v1, %v1148_v4  ;;  %v606_v13 = vpop.f32.mrf.mxu0  ;;  %v1474_v0 = vunpack.c.l.b16 %v1342_v54 }
  0xe0   :  { %v751_v49 = vpop.f32.mrf.mxu3  ;;  %v655_v19 = vpop.f32.mrf.mxu1 }
  0xe1   :  { %v1153_v16 = vrot.slane %v1152_v10, 4  ;;  %v752_v17 = vadd.f32 %v751_v49, %v702_v11  ;;  %v1150_v21 = vrot.slane %v1149_v12, 1  ;;  %v656_v32 = vadd.f32 %v655_v19, %v606_v13 }
  0xe3   :  { %v1154_v24 = vmax.f32 %v1152_v10, %v1153_v16  ;;  %v1151_v28 = vmax.f32 %v1149_v12, %v1150_v21  ;;  %v997_v29 = vmax.f32 %v656_v32, 0.0  ;;  %v994_v43 = vmax.f32 %v752_v17, 0.0 }
  0xe5   :  { %v1155_v33 = vrot.slane %v1154_v24, 2  ;;  %v1345_v30 = vpack.c.bf16 %v1151_v28, %v1151_v28  ;;  %v1073_v34 = vmul.f32 %v2798_v9, %v997_v29  ;;  %v1070_v61 = vmul.f32 %v2802_v18, %v994_v43 }
  0xe7   :  { %v1156_v36 = vmax.f32 %v1154_v24, %v1155_v33  ;;  %v704_v37 = vpop.f32.mrf.mxu2  ;;  %v1477_v39 = vunpack.c.l.b16 %v1345_v30  ;;  %v1173_v40 = vmax.f32 %v1069_v31, %v1073_v34  ;;  %v609_v42 = vpop.f32.mrf.mxu0 }
  0xe8   :  { %v753_v41 = vpop.f32.mrf.mxu3  ;;  %v658_v45 = vpop.f32.mrf.mxu1 }
  0xe9   :  { %v1157_v14 = vrot.slane %v1156_v36, 1  ;;  %v754_v44 = vadd.f32 %v753_v41, %v704_v37  ;;  %v1506_v50 = vsel %vm1505_vm0, %v1477_v39, %v1473_v38  ;;  %v1174_v15 = vrot.slane %v1173_v40, 4 }
  0xea   :  { %v659_v51 = vadd.f32 %v658_v45, %v609_v42  ;;  %804 = vmatmul.bf16.gmra.mxu0 %v2752_v52 }
  0xeb   :  { %v1158_v55 = vmax.f32 %v1156_v36, %v1157_v14  ;;  %v998_v58 = vmax.f32 %v754_v44, 0.0  ;;  %v1175_v59 = vmax.f32 %v1173_v40, %v1174_v15  ;;  %853 = vmatmul.bf16.gmra.mxu1 %v2754_v53 }
  0xec   :  { %902 = vmatmul.bf16.gmra.mxu2 %v2752_v52  ;;  %v1001_v13 = vmax.f32 %v659_v51, 0.0 }
  0xed   :  { %v1346_v60 = vpack.c.bf16 %v1158_v55, %v1158_v55  ;;  %v1074_v62 = vmul.f32 %v2804_v20, %v998_v58  ;;  %951 = vmatmul.bf16.gmra.mxu3 %v2754_v53  ;;  %v1176_v63 = vrot.slane %v1175_v59, 2 }
  0xee   :  { %v1077_v32 = vmul.f32 %v2796_v5, %v1001_v13 }
  0xef   :  { %v1478_v1 = vunpack.c.l.b16 %v1346_v60  ;;  %v1180_v2 = vmax.f32 %v1070_v61, %v1074_v62  ;;  %v707_v3 = vpop.f32.mrf.mxu2  ;;  %v1177_v4 = vmax.f32 %v1175_v59, %v1176_v63  ;;  %v611_v10 = vpop.f32.mrf.mxu0 }
  0xf0   :  { %v756_v8 = vpop.f32.mrf.mxu3  ;;  %v660_v52 = vpop.f32.mrf.mxu1 }
  0xf1   :  { %v1519_v11 = vsel %vm1505_vm0, %v1478_v1, %v1474_v0  ;;  %v1181_v46 = vrot.slane %v1180_v2, 4  ;;  %v757_v12 = vadd.f32 %v756_v8, %v707_v3  ;;  %v1178_v49 = vrot.slane %v1177_v4, 1 }
  0xf2   :  { %v661_v16 = vadd.f32 %v660_v52, %v611_v10  ;;  %v2462_v52 = vld [vmem:[#allocation8 + $0x38] sm:$0xff] }
  0xf3   :  { %v1182_v17 = vmax.f32 %v1180_v2, %v1181_v46  ;;  %v1179_v19 = vmax.f32 %v1177_v4, %v1178_v49  ;;  %v1002_v34 = vmax.f32 %v757_v12, 0.0  ;;  %1740 = vmatpush.bf16.msra.mxu0 %v2462_v52 }
  0xf4   :  { %v1005_v21 = vmax.f32 %v661_v16, 0.0 }
  0xf5   :  { %v1183_v53 = vrot.slane %v1182_v17, 2  ;;  %v1349_v22 = vpack.c.bf16 %v1179_v19, %v1179_v19  ;;  %v1078_v14 = vmul.f32 %v2802_v18, %v1002_v34 }
  0xf6   :  { %v1081_v23 = vmul.f32 %v2798_v9, %v1005_v21 }
  0xf7   :  { %v1184_v24 = vmax.f32 %v1182_v17, %v1183_v53  ;;  %v709_v25 = vpop.f32.mrf.mxu2  ;;  %v1481_v28 = vunpack.c.l.b16 %v1349_v22  ;;  %v614_v30 = vpop.f32.mrf.mxu0  ;;  %v2461_v53 = vld [vmem:[#allocation8 + $0x30] sm:$0xff]  ;;  %v2470_v22 = vld [vmem:[#allocation8 + $0x78] sm:$0xff] }
  0xf8   :  { %v1201_v29 = vmax.f32 %v1077_v32, %v1081_v23  ;;  %v758_v33 = vpop.f32.mrf.mxu3  ;;  %v663_v36 = vpop.f32.mrf.mxu1  ;;  %1741 = vmatpush.bf16.msra.mxu0 %v2461_v53  ;;  %1753 = vmatpush.bf16.msra.mxu1 %v2470_v22  ;;  %v2460_v23 = vld [vmem:[#allocation8 + $0x28] sm:$0xff] }
  0xf9   :  { %v1185_v31 = vrot.slane %v1184_v24, 1  ;;  %v759_v35 = vadd.f32 %v758_v33, %v709_v25  ;;  %v1508_v37 = vsel %vm1507_vm1, %v1481_v28, %v1506_v50 }
  0xfa   :  { %v1202_v38 = vrot.slane %v1201_v29, 4  ;;  %809 = vmatmul.bf16.gmra.mxu0 %v2760_v6 }
  0xfb   :  { %v1186_v39 = vmax.f32 %v1184_v24, %v1185_v31  ;;  %v1006_v40 = vmax.f32 %v759_v35, 0.0  ;;  %858 = vmatmul.bf16.gmra.mxu1 %v2762_v7  ;;  %v2459_v35 = vld [vmem:[#allocation8 + $0x20] sm:$0xff] }
  0xfc   :  { %v1203_v41 = vmax.f32 %v1201_v29, %v1202_v38  ;;  %907 = vmatmul.bf16.gmra.mxu2 %v2760_v6  ;;  %1742 = vmatpush.bf16.msra.mxu0 %v2460_v23 }
  0xfd   :  { %v1350_v42 = vpack.c.bf16 %v1186_v39, %v1186_v39  ;;  %v1082_v43 = vmul.f32 %v2804_v20, %v1006_v40  ;;  %956 = vmatmul.bf16.gmra.mxu3 %v2762_v7  ;;  %v2468_v39 = vld [vmem:[#allocation8 + $0x68] sm:$0xff] }
  0xfe   :  { %v1204_v44 = vrot.slane %v1203_v41, 2 }
  0xff   :  { %v1482_v45 = vunpack.c.l.b16 %v1350_v42  ;;  %v1208_v50 = vmax.f32 %v1078_v14, %v1082_v43  ;;  %v2839_v15 = vpop.f32.mrf.mxu2  ;;  %v616_v55 = vpop.f32.mrf.mxu0 }
 0x100   :  { %v1205_v51 = vmax.f32 %v1203_v41, %v1204_v44  ;;  %v2841_v54 = vpop.f32.mrf.mxu3  ;;  %v665_v6 = vpop.f32.mrf.mxu1  ;;  %1743 = vmatpush.bf16.msra.mxu0 %v2459_v35  ;;  %v2464_v35 = vld [vmem:[#allocation8 + $0x48] sm:$0xff] }
 0x101   :  { %v1520_v58 = vsel %vm1507_vm1, %v1482_v45, %v1519_v11  ;;  %v1209_v59 = vrot.slane %v1208_v50, 4  ;;  %v666_v32 = vadd.f32 %v665_v6, %v616_v55  ;;  %v762_v14 = vadd.f32 %v2841_v54, %v2839_v15 }
 0x102   :  { %v1206_v60 = vrot.slane %v1205_v51, 1 }
 0x103   :  { %v1210_v61 = vmax.f32 %v1208_v50, %v1209_v59  ;;  %v1013_v28 = vmax.f32 %v666_v32, 0.0 }
 0x104   :  { %v1207_v62 = vmax.f32 %v1205_v51, %v1206_v60  ;;  %v2467_v51 = vld [vmem:[#allocation8 + $0x60] sm:$0xff] }
 0x105   :  { %v1211_v63 = vrot.slane %v1210_v61, 2  ;;  %v1089_v40 = vmul.f32 %v2798_v9, %v1013_v28  ;;  %v2455_v28 = vld [vmem:[#allocation8] sm:$0xff] }
 0x106   :  { %v1353_v0 = vpack.c.bf16 %v1207_v62, %v1207_v62  ;;  %v1010_v62 = vmax.f32 %v762_v14, 0.0 }
 0x107   :  { %v1212_v7 = vmax.f32 %v1210_v61, %v1211_v63  ;;  %v714_v1 = vpop.f32.mrf.mxu2  ;;  %v619_v4 = vpop.f32.mrf.mxu0  ;;  %v2457_v61 = vld [vmem:[#allocation8 + $0x10] sm:$0xff] }
 0x108   :  { %v1485_v2 = vunpack.c.l.b16 %v1353_v0  ;;  %v763_v3 = vpop.f32.mrf.mxu3  ;;  %v668_v10 = vpop.f32.mrf.mxu1 }
 0x109   :  { %v1213_v8 = vrot.slane %v1212_v7, 1  ;;  %v669_v31 = vadd.f32 %v668_v10, %v619_v4  ;;  %v764_v41 = vadd.f32 %v763_v3, %v714_v1  ;;  %v2456_v10 = vld [vmem:[#allocation8 + $0x8] sm:$0xff] }
 0x10a   :  { %v2845_v46 = vsel %vm1509_vm2, %v1485_v2, %v1508_v37  ;;  %814 = vmatmul.bf16.gmra.mxu0 %v2768_v26 }
 0x10b   :  { %v1214_v12 = vmax.f32 %v1212_v7, %v1213_v8  ;;  %863 = vmatmul.bf16.gmra.mxu1 %v2770_v27  ;;  %v2466_v7 = vld [vmem:[#allocation8 + $0x58] sm:$0xff] }
 0x10c   :  { %912 = vmatmul.bf16.gmra.mxu2 %v2768_v26  ;;  %v664_v26 = vadd.f32 %v663_v36, %v614_v30  ;;  %v1017_v30 = vmax.f32 %v669_v31, 0.0  ;;  %v2458_v36 = vld [vmem:[#allocation8 + $0x18] sm:$0xff] }
 0x10d   :  { %v1354_v11 = vpack.c.bf16 %v1214_v12, %v1214_v12  ;;  %961 = vmatmul.bf16.gmra.mxu3 %v2770_v27  ;;  %v2469_v27 = vld [vmem:[#allocation8 + $0x70] sm:$0xff]  ;;  %1744 = vmatpush.bf16.msra.mxu0 %v2458_v36  ;;  %v1086_v12 = vmul.f32 %v2802_v18, %v1010_v62 }
 0x10e   :  { %1754 = vmatpush.bf16.msra.mxu1 %v2469_v27  ;;  %v1009_v37 = vmax.f32 %v664_v26, 0.0 }
 0x10f   :  { %v1486_v49 = vunpack.c.l.b16 %v1354_v11  ;;  %v717_v13 = vpop.f32.mrf.mxu2  ;;  %v621_v17 = vpop.f32.mrf.mxu0 }
 0x110   :  { %v766_v16 = vpop.f32.mrf.mxu3  ;;  %v670_v21 = vpop.f32.mrf.mxu1  ;;  %v1085_v42 = vmul.f32 %v2796_v5, %v1009_v37 }
 0x111   :  { %v2852_v19 = vsel %vm1509_vm2, %v1486_v49, %v1520_v58  ;;  %v671_v24 = vadd.f32 %v670_v21, %v621_v17  ;;  %v1014_v58 = vmax.f32 %v764_v41, 0.0  ;;  %v767_v6 = vadd.f32 %v766_v16, %v717_v13  ;;  %1745 = vmatpush.bf16.msra.mxu0 %v2457_v61  ;;  %v2465_v17 = vld [vmem:[#allocation8 + $0x50] sm:$0xff] }
 0x112   :  { %1755 = vmatpush.bf16.msra.mxu1 %v2468_v39  ;;  %v1229_v55 = vmax.f32 %v1085_v42, %v1089_v40 }
 0x113   :  { %v1021_v38 = vmax.f32 %v671_v24, 0.0  ;;  %v1090_v2 = vmul.f32 %v2804_v20, %v1014_v58  ;;  %v1018_v4 = vmax.f32 %v767_v6, 0.0 }
 0x114   :  { %v1230_v1 = vrot.slane %v1229_v55, 4 }
 0x115   :  { %v1097_v44 = vmul.f32 %v2798_v9, %v1021_v38  ;;  %v1236_v53 = vmax.f32 %v1086_v12, %v1090_v2  ;;  %v1094_v26 = vmul.f32 %v2802_v18, %v1018_v4  ;;  %1746 = vmatpush.bf16.msra.mxu0 %v2456_v10 }
 0x116   :  { %1756 = vmatpush.bf16.msra.mxu1 %v2467_v51  ;;  %v1231_v21 = vmax.f32 %v1229_v55, %v1230_v1 }
 0x117   :  { %v719_v25 = vpop.f32.mrf.mxu2  ;;  %v624_v33 = vpop.f32.mrf.mxu0  ;;  %v1237_v38 = vrot.slane %v1236_v53, 4 }
 0x118   :  { %v768_v29 = vpop.f32.mrf.mxu3  ;;  %v673_v34 = vpop.f32.mrf.mxu1  ;;  %v1232_v37 = vrot.slane %v1231_v21, 2 }
 0x119   :  { %v674_v43 = vadd.f32 %v673_v34, %v624_v33  ;;  %v769_v45 = vadd.f32 %v768_v29, %v719_v25  ;;  %1747 = vmatpush.bf16.msra.mxu0 %v2455_v28 }
 0x11a   :  { %819 = vmatmul.bf16.gmra.mxu0 %v2776_v47  ;;  %1757 = vmatpush.bf16.msra.mxu1 %v2466_v7 }
 0x11b   :  { %868 = vmatmul.bf16.gmra.mxu1 %v2778_v48  ;;  %v1025_v63 = vmax.f32 %v674_v43, 0.0  ;;  %v1022_v0 = vmax.f32 %v769_v45, 0.0  ;;  %v1233_v45 = vmax.f32 %v1231_v21, %v1232_v37 }
 0x11c   :  { %917 = vmatmul.bf16.gmra.mxu2 %v2776_v47 }
 0x11d   :  { %966 = vmatmul.bf16.gmra.mxu3 %v2778_v48  ;;  %v1093_v48 = vmul.f32 %v2796_v5, %v1017_v30  ;;  %v1101_v11 = vmul.f32 %v2796_v5, %v1025_v63  ;;  %v1098_v13 = vmul.f32 %v2804_v20, %v1022_v0 }
 0x11e   :  { %1758 = vmatpush.bf16.msra.mxu1 %v2465_v17 }
 0x11f   :  { %v722_v50 = vpop.f32.mrf.mxu2  ;;  %v626_v59 = vpop.f32.mrf.mxu0  ;;  %v1257_v54 = vmax.f32 %v1093_v48, %v1097_v44  ;;  %v1264_v31 = vmax.f32 %v1094_v26, %v1098_v13  ;;  %v2463_v44 = vld [vmem:[#allocation8 + $0x40] sm:$0xff] }
 0x120   :  { %v771_v47 = vpop.f32.mrf.mxu3  ;;  %v675_v60 = vpop.f32.mrf.mxu1 }
 0x121   :  { %v676_v15 = vadd.f32 %v675_v60, %v626_v59  ;;  %v772_v8 = vadd.f32 %v771_v47, %v722_v50  ;;  %v1258_v49 = vrot.slane %v1257_v54, 4  ;;  %v1265_v42 = vrot.slane %v1264_v31, 4 }
 0x122   :  { %1759 = vmatpush.bf16.msra.mxu1 %v2464_v35  ;;  %v1238_v50 = vmax.f32 %v1236_v53, %v1237_v38  ;;  %v1234_v60 = vrot.slane %v1233_v45, 1  ;;  %v1044_v38 = vld [vmem:[#allocation5 + $0x18] sm:$0xff] }
 0x123   :  { %v1029_v3 = vmax.f32 %v676_v15, 0.0  ;;  %v1026_v24 = vmax.f32 %v772_v8, 0.0  ;;  %v1259_v33 = vmax.f32 %v1257_v54, %v1258_v49 }
 0x124   :  { %v1239_v61 = vrot.slane %v1238_v50, 2  ;;  %v1235_v4 = vmax.f32 %v1233_v45, %v1234_v60 }
 0x125   :  { %v1105_v52 = vmul.f32 %v2798_v9, %v1029_v3  ;;  %v1102_v39 = vmul.f32 %v2802_v18, %v1026_v24  ;;  %v1260_v36 = vrot.slane %v1259_v33, 2 }
 0x126   :  { %1760 = vmatpush.bf16.msra.mxu1 %v2463_v44  ;;  %v1240_v8 = vmax.f32 %v1238_v50, %v1239_v61 }
 0x127   :  { %v724_v16 = vpop.f32.mrf.mxu2  ;;  %v1285_v22 = vmax.f32 %v1101_v11, %v1105_v52  ;;  %v629_v23 = vpop.f32.mrf.mxu0  ;;  %v1261_v6 = vmax.f32 %v1259_v33, %v1260_v36  ;;  %v1042_v33 = vld [vmem:[#allocation5 + $0x8] sm:$0xff] }
 0x128   :  { %v773_v32 = vpop.f32.mrf.mxu3  ;;  %v678_v27 = vpop.f32.mrf.mxu1  ;;  %v2880_v44 = vunpack.c.l.bf16 %v1042_v33 }
 0x129   :  { %v774_v25 = vadd.f32 %v773_v32, %v724_v16  ;;  %v1286_v29 = vrot.slane %v1285_v22, 4  ;;  %v679_v30 = vadd.f32 %v678_v27, %v629_v23  ;;  %v1262_v1 = vrot.slane %v1261_v6, 1 }
 0x12a   :  { %824 = vmatmul.bf16.gmra.mxu0 %v2784_v56  ;;  %v1357_v23 = vpack.c.bf16 %v1235_v4, %v1235_v4 }
 0x12b   :  { %v1030_v34 = vmax.f32 %v774_v25, 0.0  ;;  %873 = vmatmul.bf16.gmra.mxu1 %v2786_v57  ;;  %v1287_v40 = vmax.f32 %v1285_v22, %v1286_v29  ;;  %v1033_v59 = vmax.f32 %v679_v30, 0.0  ;;  %v1263_v22 = vmax.f32 %v1261_v6, %v1262_v1 }
 0x12c   :  { %922 = vmatmul.bf16.gmra.mxu2 %v2784_v56 }
 0x12d   :  { %v1106_v41 = vmul.f32 %v2804_v20, %v1030_v34  ;;  %971 = vmatmul.bf16.gmra.mxu3 %v2786_v57  ;;  %v1288_v56 = vrot.slane %v1287_v40, 2  ;;  %v1266_v57 = vmax.f32 %v1264_v31, %v1265_v42  ;;  %v1109_v0 = vmul.f32 %v2796_v5, %v1033_v59 }
 0x12e   :  { %v1361_v31 = vpack.c.bf16 %v1263_v22, %v1263_v22 }
 0x12f   :  { %v1292_v14 = vmax.f32 %v1102_v39, %v1106_v41  ;;  %v727_v43 = vpop.f32.mrf.mxu2  ;;  %v631_v55 = vpop.f32.mrf.mxu0  ;;  %v1289_v15 = vmax.f32 %v1287_v40, %v1288_v56  ;;  %v1267_v2 = vrot.slane %v1266_v57, 2  ;;  %v1489_v39 = vunpack.c.l.b16 %v1357_v23 }
 0x130   :  { %v776_v51 = vpop.f32.mrf.mxu3  ;;  %v680_v47 = vpop.f32.mrf.mxu1  ;;  %v1493_v56 = vunpack.c.l.b16 %v1361_v31 }
 0x131   :  { %v1293_v58 = vrot.slane %v1292_v14, 4  ;;  %v681_v48 = vadd.f32 %v680_v47, %v631_v55  ;;  %v777_v54 = vadd.f32 %v776_v51, %v727_v43  ;;  %v1290_v49 = vrot.slane %v1289_v15, 1 }
 0x132   :  { %v1268_v32 = vmax.f32 %v1266_v57, %v1267_v2  ;;  %v2882_v55 = vunpack.c.l.bf16 %v1044_v38  ;;  %v1512_v59 = vsel %vm1511_vm3, %v1489_v39, %v2845_v46 }
 0x133   :  { %v1294_v62 = vmax.f32 %v1292_v14, %v1293_v58  ;;  %v1037_v63 = vmax.f32 %v681_v48, 0.0  ;;  %v1034_v13 = vmax.f32 %v777_v54, 0.0  ;;  %v1291_v25 = vmax.f32 %v1289_v15, %v1290_v49 }
 0x134   :  { %v1269_v34 = vrot.slane %v1268_v32, 1  ;;  %v2887_v54 = vunpack.c.h.bf16 %v1042_v33 }
 0x135   :  { %v1113_v7 = vmul.f32 %v2798_v9, %v1037_v63  ;;  %v1295_v10 = vrot.slane %v1294_v62, 2  ;;  %v1241_v9 = vrot.slane %v1240_v8, 1  ;;  %v1110_v27 = vmul.f32 %v2802_v18, %v1034_v13 }
 0x136   :  { %v1365_v14 = vpack.c.bf16 %v1291_v25, %v1291_v25  ;;  %v1270_v58 = vmax.f32 %v1268_v32, %v1269_v34  ;;  %v2478_v32 = vld [vmem:[#allocation8 + $0xb8] sm:$0xff] }
 0x137   :  { %v729_v3 = vpop.f32.mrf.mxu2  ;;  %v1313_v12 = vmax.f32 %v1109_v0, %v1113_v7  ;;  %v790_v52 = vpop.f32.mrf.mxu0  ;;  %v1296_v26 = vmax.f32 %v1294_v62, %v1295_v10  ;;  %v1242_v40 = vmax.f32 %v1240_v8, %v1241_v9  ;;  %v1514_v7 = vsel %vm1513_vm4, %v1493_v56, %v1512_v59  ;;  %1766 = vmatpush.bf16.msra.mxu2 %v2478_v32 }
 0x138   :  { %v778_v11 = vpop.f32.mrf.mxu3  ;;  %v839_v17 = vpop.f32.mrf.mxu1  ;;  %v1497_v61 = vunpack.c.l.b16 %v1365_v14  ;;  %v1362_v1 = vpack.c.bf16 %v1270_v58, %v1270_v58 }
 0x139   :  { %v779_v16 = vadd.f32 %v778_v11, %v729_v3  ;;  %v1314_v21 = vrot.slane %v1313_v12, 4  ;;  %v840_v53 = vadd.f32 %v839_v17, %v790_v52  ;;  %v1297_v41 = vrot.slane %v1296_v26, 1 }
 0x13a   :  { %v1358_v60 = vpack.c.bf16 %v1242_v40, %v1242_v40  ;;  %v1516_v17 = vsel %vm1515_vm5, %v1497_v61, %v1514_v7  ;;  %v1494_v23 = vunpack.c.l.b16 %v1362_v1  ;;  %v2485_v7 = vld [vmem:[#allocation8 + $0xf0] sm:$0xff] }
 0x13b   :  { %v1038_v5 = vmax.f32 %v779_v16, 0.0  ;;  %v1315_v24 = vmax.f32 %v1313_v12, %v1314_v21  ;;  %v979_v50 = vmax.f32 %v840_v53, 0.0  ;;  %v1298_v48 = vmax.f32 %v1296_v26, %v1297_v41 }
 0x13c   :  { %v2891_v12 = vunpack.c.h.bf16 %v1044_v38  ;;  %v1490_v21 = vunpack.c.l.b16 %v1358_v60 }
 0x13d   :  { %v1114_v28 = vmul.f32 %v2804_v20, %v1038_v5  ;;  %v1316_v29 = vrot.slane %v1315_v24, 2  ;;  %v1055_v15 = vmul.f32 %v2880_v44, %v979_v50  ;;  %v1366_v46 = vpack.c.bf16 %v1298_v48, %v1298_v48  ;;  %v2486_v5 = vld [vmem:[#allocation8 + $0xf8] sm:$0xff] }
 0x13e   :  { %1779 = vmatpush.bf16.msra.mxu3 %v2486_v5  ;;  %v1522_v31 = vsel %vm1511_vm3, %v1490_v21, %v2852_v19 }
 0x13f   :  { %v1320_v35 = vmax.f32 %v1110_v27, %v1114_v28  ;;  %v888_v37 = vpop.f32.mrf.mxu2  ;;  %v1317_v30 = vmax.f32 %v1315_v24, %v1316_v29  ;;  %v792_v42 = vpop.f32.mrf.mxu0  ;;  %v1498_v25 = vunpack.c.l.b16 %v1366_v46  ;;  %v1523_v34 = vsel %vm1513_vm4, %v1494_v23, %v1522_v31 }
 0x140   :  { %v937_v36 = vpop.f32.mrf.mxu3  ;;  %v841_v20 = vpop.f32.mrf.mxu1 }
 0x141   :  { %v1321_v43 = vrot.slane %v1320_v35, 4  ;;  %v938_v18 = vadd.f32 %v937_v36, %v888_v37  ;;  %v1318_v45 = vrot.slane %v1317_v30, 1  ;;  %v842_v51 = vadd.f32 %v841_v20, %v792_v42 }
 0x142   :  { %1780 = vmatpush.bf16.msra.mxu3 %v2485_v7 }
 0x143   :  { %v1322_v47 = vmax.f32 %v1320_v35, %v1321_v43  ;;  %v1319_v6 = vmax.f32 %v1317_v30, %v1318_v45  ;;  %v983_v57 = vmax.f32 %v842_v51, 0.0  ;;  %v980_v49 = vmax.f32 %v938_v18, 0.0 }
 0x144   :  { %v1524_v30 = vsel %vm1515_vm5, %v1498_v25, %v1523_v34 }
 0x145   :  { %v1323_v62 = vrot.slane %v1322_v47, 2  ;;  %v1369_v63 = vpack.c.bf16 %v1319_v6, %v1319_v6  ;;  %v1059_v0 = vmul.f32 %v2882_v55, %v983_v57  ;;  %v1056_v29 = vmul.f32 %v2887_v54, %v980_v49 }
 0x147   :  { %v1324_v2 = vmax.f32 %v1322_v47, %v1323_v62  ;;  %v890_v3 = vpop.f32.mrf.mxu2  ;;  %v1501_v4 = vunpack.c.l.b16 %v1369_v63  ;;  %v1131_v8 = vmax.f32 %v1055_v15, %v1059_v0  ;;  %v795_v11 = vpop.f32.mrf.mxu0  ;;  %v2477_v0 = vld [vmem:[#allocation8 + $0xb0] sm:$0xff] }
 0x148   :  { %v939_v10 = vpop.f32.mrf.mxu3  ;;  %v844_v16 = vpop.f32.mrf.mxu1  ;;  %1767 = vmatpush.bf16.msra.mxu2 %v2477_v0 }
 0x149   :  { %v1325_v52 = vrot.slane %v1324_v2, 1  ;;  %v940_v13 = vadd.f32 %v939_v10, %v890_v3  ;;  %v845_v53 = vadd.f32 %v844_v16, %v795_v11  ;;  %v1518_v22 = vsel %vm1517_vm6, %v1501_v4, %v1516_v17 }
 0x14a   :  { %v1540_v24 = vpack.c.b16 %v1518_v22, %v1518_v22  ;;  %v1132_v27 = vrot.slane %v1131_v8, 4 }
 0x14b   :  { %v1326_v9 = vmax.f32 %v1324_v2, %v1325_v52  ;;  %v984_v26 = vmax.f32 %v940_v13, 0.0  ;;  %v987_v43 = vmax.f32 %v845_v53, 0.0 }
 0x14c   :  { %1748 = vmatmul.bf16.vlgmr.msra.gmra.mxu0 %v1540_v24  ;;  %v1133_v39 = vmax.f32 %v1131_v8, %v1132_v27 }
 0x14d   :  { %v1370_v28 = vpack.c.bf16 %v1326_v9, %v1326_v9  ;;  %v1060_v33 = vmul.f32 %v2891_v12, %v984_v26  ;;  %v1063_v51 = vmul.f32 %v2880_v44, %v987_v43 }
 0x14e   :  { %v1134_v50 = vrot.slane %v1133_v39, 2 }
 0x14f   :  { %v1502_v35 = vunpack.c.l.b16 %v1370_v28  ;;  %v1138_v37 = vmax.f32 %v1056_v29, %v1060_v33  ;;  %v893_v38 = vpop.f32.mrf.mxu2  ;;  %v797_v41 = vpop.f32.mrf.mxu0 }
 0x150   :  { %v942_v40 = vpop.f32.mrf.mxu3  ;;  %v846_v42 = vpop.f32.mrf.mxu1  ;;  %v1135_v59 = vmax.f32 %v1133_v39, %v1134_v50 }
 0x151   :  { %v943_v36 = vadd.f32 %v942_v40, %v893_v38  ;;  %v1525_v14 = vsel %vm1517_vm6, %v1502_v35, %v1524_v30  ;;  %v847_v18 = vadd.f32 %v846_v42, %v797_v41  ;;  %v1139_v45 = vrot.slane %v1138_v37, 4 }
 0x152   :  { %v1541_v20 = vpack.c.b16 %v1525_v14, %v1525_v14  ;;  %v1136_v3 = vrot.slane %v1135_v59, 1 }
 0x153   :  { %v991_v19 = vmax.f32 %v847_v18, 0.0  ;;  %v1140_v58 = vmax.f32 %v1138_v37, %v1139_v45  ;;  %v988_v60 = vmax.f32 %v943_v36, 0.0 }
 0x154   :  { %1761 = vmatmul.bf16.vlgmr.msra.gmra.mxu1 %v1541_v20  ;;  %v1137_v13 = vmax.f32 %v1135_v59, %v1136_v3 }
 0x155   :  { %v1067_v56 = vmul.f32 %v2882_v55, %v991_v19  ;;  %v1141_v1 = vrot.slane %v1140_v58, 2  ;;  %v1064_v4 = vmul.f32 %v2887_v54, %v988_v60  ;;  %v2476_v19 = vld [vmem:[#allocation8 + $0xa8] sm:$0xff] }
 0x156   :  { %v1343_v25 = vpack.c.bf16 %v1137_v13, %v1137_v13  ;;  %1768 = vmatpush.bf16.msra.mxu2 %v2476_v19 }
 0x157   :  { %v895_v47 = vpop.f32.mrf.mxu2  ;;  %v1159_v48 = vmax.f32 %v1063_v51, %v1067_v56  ;;  %v800_v57 = vpop.f32.mrf.mxu0  ;;  %v1142_v11 = vmax.f32 %v1140_v58, %v1141_v1  ;;  %v2484_v51 = vld [vmem:[#allocation8 + $0xe8] sm:$0xff] }
 0x158   :  { %v944_v6 = vpop.f32.mrf.mxu3  ;;  %v849_v62 = vpop.f32.mrf.mxu1  ;;  %v1475_v39 = vunpack.c.l.b16 %v1343_v25  ;;  %1781 = vmatpush.bf16.msra.mxu3 %v2484_v51 }
 0x159   :  { %v945_v61 = vadd.f32 %v944_v6, %v895_v47  ;;  %v1160_v63 = vrot.slane %v1159_v48, 4  ;;  %v850_v15 = vadd.f32 %v849_v62, %v800_v57  ;;  %v1143_v26 = vrot.slane %v1142_v11, 1 }
 0x15b   :  { %v992_v2 = vmax.f32 %v945_v61, 0.0  ;;  %v1161_v46 = vmax.f32 %v1159_v48, %v1160_v63  ;;  %v995_v23 = vmax.f32 %v850_v15, 0.0  ;;  %v1144_v35 = vmax.f32 %v1142_v11, %v1143_v26 }
 0x15d   :  { %v1068_v8 = vmul.f32 %v2891_v12, %v992_v2  ;;  %v1162_v10 = vrot.slane %v1161_v46, 2  ;;  %v1071_v31 = vmul.f32 %v2880_v44, %v995_v23  ;;  %v1344_v56 = vpack.c.bf16 %v1144_v35, %v1144_v35 }
 0x15f   :  { %v1166_v52 = vmax.f32 %v1064_v4, %v1068_v8  ;;  %v898_v49 = vpop.f32.mrf.mxu2  ;;  %v1163_v16 = vmax.f32 %v1161_v46, %v1162_v10  ;;  %v802_v21 = vpop.f32.mrf.mxu0  ;;  %v1476_v61 = vunpack.c.l.b16 %v1344_v56 }
 0x160   :  { %v947_v17 = vpop.f32.mrf.mxu3  ;;  %v851_v32 = vpop.f32.mrf.mxu1 }
 0x161   :  { %v1167_v53 = vrot.slane %v1166_v52, 4  ;;  %v948_v22 = vadd.f32 %v947_v17, %v898_v49  ;;  %v1164_v5 = vrot.slane %v1163_v16, 1  ;;  %v852_v9 = vadd.f32 %v851_v32, %v802_v21 }
 0x163   :  { %v1168_v24 = vmax.f32 %v1166_v52, %v1167_v53  ;;  %v1165_v27 = vmax.f32 %v1163_v16, %v1164_v5  ;;  %v999_v28 = vmax.f32 %v852_v9, 0.0  ;;  %v996_v14 = vmax.f32 %v948_v22, 0.0 }
 0x165   :  { %v1169_v29 = vrot.slane %v1168_v24, 2  ;;  %v1347_v33 = vpack.c.bf16 %v1165_v27, %v1165_v27  ;;  %v1075_v34 = vmul.f32 %v2882_v55, %v999_v28  ;;  %v1072_v6 = vmul.f32 %v2887_v54, %v996_v14 }
 0x167   :  { %v1170_v37 = vmax.f32 %v1168_v24, %v1169_v29  ;;  %v900_v38 = vpop.f32.mrf.mxu2  ;;  %v1479_v40 = vunpack.c.l.b16 %v1347_v33  ;;  %v1187_v41 = vmax.f32 %v1071_v31, %v1075_v34  ;;  %v805_v36 = vpop.f32.mrf.mxu0  ;;  %v2475_v31 = vld [vmem:[#allocation8 + $0xa0] sm:$0xff] }
 0x168   :  { %v949_v30 = vpop.f32.mrf.mxu3  ;;  %v854_v18 = vpop.f32.mrf.mxu1  ;;  %v2483_v34 = vld [vmem:[#allocation8 + $0xe0] sm:$0xff]  ;;  %1769 = vmatpush.bf16.msra.mxu2 %v2475_v31 }
 0x169   :  { %v1171_v42 = vrot.slane %v1170_v37, 1  ;;  %v950_v43 = vadd.f32 %v949_v30, %v900_v38  ;;  %v1526_v20 = vsel %vm1505_vm0, %v1479_v40, %v1475_v39  ;;  %v1188_v45 = vrot.slane %v1187_v41, 4  ;;  %1782 = vmatpush.bf16.msra.mxu3 %v2483_v34 }
 0x16a   :  { %v855_v50 = vadd.f32 %v854_v18, %v805_v36 }
 0x16b   :  { %v1172_v58 = vmax.f32 %v1170_v37, %v1171_v42  ;;  %v1000_v47 = vmax.f32 %v950_v43, 0.0  ;;  %v1189_v59 = vmax.f32 %v1187_v41, %v1188_v45 }
 0x16c   :  { %v1003_v10 = vmax.f32 %v855_v50, 0.0 }
 0x16d   :  { %v1348_v48 = vpack.c.bf16 %v1172_v58, %v1172_v58  ;;  %v1076_v57 = vmul.f32 %v2891_v12, %v1000_v47  ;;  %v1190_v60 = vrot.slane %v1189_v59, 2 }
 0x16e   :  { %v1079_v21 = vmul.f32 %v2880_v44, %v1003_v10 }
 0x16f   :  { %v1480_v62 = vunpack.c.l.b16 %v1348_v48  ;;  %v1194_v63 = vmax.f32 %v1072_v6, %v1076_v57  ;;  %v903_v15 = vpop.f32.mrf.mxu2  ;;  %v1191_v0 = vmax.f32 %v1189_v59, %v1190_v60  ;;  %v807_v1 = vpop.f32.mrf.mxu0 }
 0x170   :  { %v952_v7 = vpop.f32.mrf.mxu3  ;;  %v856_v4 = vpop.f32.mrf.mxu1 }
 0x171   :  { %v1533_v2 = vsel %vm1505_vm0, %v1480_v62, %v1476_v61  ;;  %v1195_v3 = vrot.slane %v1194_v63, 4  ;;  %v953_v46 = vadd.f32 %v952_v7, %v903_v15  ;;  %v1192_v8 = vrot.slane %v1191_v0, 1  ;;  %v2482_v7 = vld [vmem:[#allocation8 + $0xd8] sm:$0xff] }
 0x172   :  { %v857_v11 = vadd.f32 %v856_v4, %v807_v1  ;;  %1783 = vmatpush.bf16.msra.mxu3 %v2482_v7 }
 0x173   :  { %v1196_v52 = vmax.f32 %v1194_v63, %v1195_v3  ;;  %v1193_v49 = vmax.f32 %v1191_v0, %v1192_v8  ;;  %v1004_v25 = vmax.f32 %v953_v46, 0.0  ;;  %v2474_v0 = vld [vmem:[#allocation8 + $0x98] sm:$0xff] }
 0x174   :  { %v1007_v13 = vmax.f32 %v857_v11, 0.0  ;;  %1770 = vmatpush.bf16.msra.mxu2 %v2474_v0  ;;  %v2480_v0 = vld [vmem:[#allocation8 + $0xc8] sm:$0xff] }
 0x175   :  { %v1197_v16 = vrot.slane %v1196_v52, 2  ;;  %v1351_v17 = vpack.c.bf16 %v1193_v49, %v1193_v49  ;;  %v1080_v40 = vmul.f32 %v2887_v54, %v1004_v25 }
 0x176   :  { %v1083_v53 = vmul.f32 %v2882_v55, %v1007_v13 }
 0x177   :  { %v1198_v22 = vmax.f32 %v1196_v52, %v1197_v16  ;;  %v905_v32 = vpop.f32.mrf.mxu2  ;;  %v1483_v5 = vunpack.c.l.b16 %v1351_v17  ;;  %v810_v26 = vpop.f32.mrf.mxu0 }
 0x178   :  { %v1215_v23 = vmax.f32 %v1079_v21, %v1083_v53  ;;  %v954_v9 = vpop.f32.mrf.mxu3  ;;  %v859_v28 = vpop.f32.mrf.mxu1  ;;  %v2473_v21 = vld [vmem:[#allocation8 + $0x90] sm:$0xff] }
 0x179   :  { %v1199_v24 = vrot.slane %v1198_v22, 1  ;;  %v955_v27 = vadd.f32 %v954_v9, %v905_v32  ;;  %v1527_v29 = vsel %vm1507_vm1, %v1483_v5, %v1526_v20  ;;  %v2481_v53 = vld [vmem:[#allocation8 + $0xd0] sm:$0xff]  ;;  %1771 = vmatpush.bf16.msra.mxu2 %v2473_v21 }
 0x17a   :  { %v1216_v33 = vrot.slane %v1215_v23, 4  ;;  %1784 = vmatpush.bf16.msra.mxu3 %v2481_v53 }
 0x17b   :  { %v1200_v35 = vmax.f32 %v1198_v22, %v1199_v24  ;;  %v1008_v37 = vmax.f32 %v955_v27, 0.0  ;;  %v860_v22 = vadd.f32 %v859_v28, %v810_v26 }
 0x17c   :  { %v1217_v38 = vmax.f32 %v1215_v23, %v1216_v33 }
 0x17d   :  { %v1352_v39 = vpack.c.bf16 %v1200_v35, %v1200_v35  ;;  %v1084_v41 = vmul.f32 %v2891_v12, %v1008_v37  ;;  %v1011_v24 = vmax.f32 %v860_v22, 0.0 }
 0x17e   :  { %v1218_v30 = vrot.slane %v1217_v38, 2  ;;  %1785 = vmatpush.bf16.msra.mxu3 %v2480_v0 }
 0x17f   :  { %v1484_v36 = vunpack.c.l.b16 %v1352_v39  ;;  %v1222_v42 = vmax.f32 %v1080_v40, %v1084_v41  ;;  %v908_v14 = vpop.f32.mrf.mxu2  ;;  %v812_v20 = vpop.f32.mrf.mxu0  ;;  %v1087_v26 = vmul.f32 %v2880_v44, %v1011_v24  ;;  %v2479_v24 = vld [vmem:[#allocation8 + $0xc0] sm:$0xff] }
 0x180   :  { %v1219_v43 = vmax.f32 %v1217_v38, %v1218_v30  ;;  %v957_v18 = vpop.f32.mrf.mxu3  ;;  %v861_v19 = vpop.f32.mrf.mxu1 }
 0x181   :  { %v1534_v45 = vsel %vm1507_vm1, %v1484_v36, %v1533_v2  ;;  %v1223_v50 = vrot.slane %v1222_v42, 4  ;;  %v862_v52 = vadd.f32 %v861_v19, %v812_v20  ;;  %v958_v35 = vadd.f32 %v957_v18, %v908_v14  ;;  %v2472_v18 = vld [vmem:[#allocation8 + $0x88] sm:$0xff] }
 0x182   :  { %v1220_v51 = vrot.slane %v1219_v43, 1  ;;  %1772 = vmatpush.bf16.msra.mxu2 %v2472_v18  ;;  %1786 = vmatpush.bf16.msra.mxu3 %v2479_v24 }
 0x183   :  { %v1224_v56 = vmax.f32 %v1222_v42, %v1223_v50  ;;  %v1015_v23 = vmax.f32 %v862_v52, 0.0 }
 0x184   :  { %v1221_v58 = vmax.f32 %v1219_v43, %v1220_v51 }
 0x185   :  { %v1225_v47 = vrot.slane %v1224_v56, 2  ;;  %v1091_v33 = vmul.f32 %v2882_v55, %v1015_v23 }
 0x186   :  { %v1355_v59 = vpack.c.bf16 %v1221_v58, %v1221_v58 }
 0x187   :  { %v1226_v48 = vmax.f32 %v1224_v56, %v1225_v47  ;;  %v910_v6 = vpop.f32.mrf.mxu2  ;;  %v815_v61 = vpop.f32.mrf.mxu0  ;;  %v1243_v43 = vmax.f32 %v1087_v26, %v1091_v33 }
 0x188   :  { %v1487_v57 = vunpack.c.l.b16 %v1355_v59  ;;  %v959_v60 = vpop.f32.mrf.mxu3  ;;  %v864_v63 = vpop.f32.mrf.mxu1 }
 0x189   :  { %v1227_v62 = vrot.slane %v1226_v48, 1  ;;  %v865_v5 = vadd.f32 %v864_v63, %v815_v61  ;;  %v960_v25 = vadd.f32 %v959_v60, %v910_v6  ;;  %v1244_v59 = vrot.slane %v1243_v43, 4 }
 0x18a   :  { %v2919_v15 = vsel %vm1509_vm2, %v1487_v57, %v1527_v29 }
 0x18b   :  { %v1228_v1 = vmax.f32 %v1226_v48, %v1227_v62  ;;  %v1019_v27 = vmax.f32 %v865_v5, 0.0  ;;  %v1016_v41 = vmax.f32 %v960_v25, 0.0 }
 0x18d   :  { %v1356_v2 = vpack.c.bf16 %v1228_v1, %v1228_v1  ;;  %v1095_v30 = vmul.f32 %v2880_v44, %v1019_v27  ;;  %v1092_v56 = vmul.f32 %v2891_v12, %v1016_v41 }
 0x18f   :  { %v1488_v3 = vunpack.c.l.b16 %v1356_v2  ;;  %v913_v46 = vpop.f32.mrf.mxu2  ;;  %v817_v8 = vpop.f32.mrf.mxu0 }
 0x190   :  { %v962_v4 = vpop.f32.mrf.mxu3  ;;  %v866_v11 = vpop.f32.mrf.mxu1 }
 0x191   :  { %v2922_v10 = vsel %vm1509_vm2, %v1488_v3, %v1534_v45  ;;  %v867_v13 = vadd.f32 %v866_v11, %v817_v8  ;;  %v963_v28 = vadd.f32 %v962_v4, %v913_v46  ;;  %v1012_v45 = vmax.f32 %v958_v35, 0.0  ;;  %v2471_v46 = vld [vmem:[#allocation8 + $0x80] sm:$0xff] }
 0x192   :  { %v1245_v11 = vmax.f32 %v1243_v43, %v1244_v59  ;;  %1773 = vmatpush.bf16.msra.mxu2 %v2471_v46 }
 0x193   :  { %v1023_v9 = vmax.f32 %v867_v13, 0.0  ;;  %v1020_v51 = vmax.f32 %v963_v28, 0.0  ;;  %v1088_v57 = vmul.f32 %v2887_v54, %v1012_v45 }
 0x195   :  { %v1099_v37 = vmul.f32 %v2882_v55, %v1023_v9  ;;  %v1096_v7 = vmul.f32 %v2887_v54, %v1020_v51  ;;  %v1250_v4 = vmax.f32 %v1088_v57, %v1092_v56 }
 0x197   :  { %v915_v49 = vpop.f32.mrf.mxu2  ;;  %v820_v17 = vpop.f32.mrf.mxu0  ;;  %v1271_v50 = vmax.f32 %v1095_v30, %v1099_v37  ;;  %v1251_v53 = vrot.slane %v1250_v4, 4 }
 0x198   :  { %v964_v16 = vpop.f32.mrf.mxu3  ;;  %v869_v32 = vpop.f32.mrf.mxu1 }
 0x199   :  { %v870_v29 = vadd.f32 %v869_v32, %v820_v17  ;;  %v965_v31 = vadd.f32 %v964_v16, %v915_v49  ;;  %v1272_v60 = vrot.slane %v1271_v50, 4  ;;  %v1246_v32 = vrot.slane %v1245_v11, 2 }
 0x19a   :  { %v1252_v35 = vmax.f32 %v1250_v4, %v1251_v53 }
 0x19b   :  { %v1027_v36 = vmax.f32 %v870_v29, 0.0  ;;  %v1024_v20 = vmax.f32 %v965_v31, 0.0  ;;  %v1273_v13 = vmax.f32 %v1271_v50, %v1272_v60 }
 0x19d   :  { %v1103_v58 = vmul.f32 %v2880_v44, %v1027_v36  ;;  %v1100_v48 = vmul.f32 %v2891_v12, %v1024_v20  ;;  %v1274_v25 = vrot.slane %v1273_v13, 2 }
 0x19f   :  { %v918_v34 = vpop.f32.mrf.mxu2  ;;  %v822_v39 = vpop.f32.mrf.mxu0  ;;  %v1278_v52 = vmax.f32 %v1096_v7, %v1100_v48  ;;  %v1275_v28 = vmax.f32 %v1273_v13, %v1274_v25  ;;  %v2494_v48 = vld [vmem:[#allocation10 + $0x38] sm:$0xff] }
 0x1a0   :  { %v967_v38 = vpop.f32.mrf.mxu3  ;;  %v871_v40 = vpop.f32.mrf.mxu1  ;;  %1862 = vmatpush.bf16.msrb.mxu0 %v2494_v48 }
 0x1a1   :  { %v872_v42 = vadd.f32 %v871_v40, %v822_v39  ;;  %v968_v14 = vadd.f32 %v967_v38, %v918_v34  ;;  %v1279_v5 = vrot.slane %v1278_v52, 4  ;;  %v1247_v39 = vmax.f32 %v1245_v11, %v1246_v32 }
 0x1a2   :  { %v1276_v51 = vrot.slane %v1275_v28, 1 }
 0x1a3   :  { %v1031_v19 = vmax.f32 %v872_v42, 0.0  ;;  %v1028_v1 = vmax.f32 %v968_v14, 0.0  ;;  %v1280_v26 = vmax.f32 %v1278_v52, %v1279_v5  ;;  %v1253_v42 = vrot.slane %v1252_v35, 2  ;;  %v2492_v52 = vld [vmem:[#allocation10 + $0x28] sm:$0xff] }
 0x1a4   :  { %v1248_v45 = vrot.slane %v1247_v39, 1 }
 0x1a5   :  { %v1107_v47 = vmul.f32 %v2882_v55, %v1031_v19  ;;  %v1104_v16 = vmul.f32 %v2887_v54, %v1028_v1  ;;  %v1281_v50 = vrot.slane %v1280_v26, 2 }
 0x1a6   :  { %v1249_v60 = vmax.f32 %v1247_v39, %v1248_v45  ;;  %v2507_v45 = vld [vmem:[%s2963_s4] ss:$0 sm:$0xff] }
 0x1a7   :  { %v920_v6 = vpop.f32.mrf.mxu2  ;;  %v1299_v61 = vmax.f32 %v1103_v58, %v1107_v47  ;;  %v825_v63 = vpop.f32.mrf.mxu0 }
 0x1a8   :  { %v969_v62 = vpop.f32.mrf.mxu3  ;;  %v874_v3 = vpop.f32.mrf.mxu1  ;;  %v1359_v4 = vpack.c.bf16 %v1249_v60, %v1249_v60  ;;  %v2489_v60 = vld [vmem:[#allocation10 + $0x10] sm:$0xff] }
 0x1a9   :  { %v970_v2 = vadd.f32 %v969_v62, %v920_v6  ;;  %v1300_v8 = vrot.slane %v1299_v61, 4  ;;  %v875_v22 = vadd.f32 %v874_v3, %v825_v63  ;;  %v1254_v6 = vmax.f32 %v1252_v35, %v1253_v42 }
 0x1aa   :  { %v1277_v63 = vmax.f32 %v1275_v28, %v1276_v51  ;;  %v1491_v32 = vunpack.c.l.b16 %v1359_v4 }
 0x1ab   :  { %v1032_v49 = vmax.f32 %v970_v2, 0.0  ;;  %v1301_v17 = vmax.f32 %v1299_v61, %v1300_v8  ;;  %v1035_v37 = vmax.f32 %v875_v22, 0.0  ;;  %v1282_v61 = vmax.f32 %v1280_v26, %v1281_v50 }
 0x1ac   :  { %v1255_v3 = vrot.slane %v1254_v6, 1 }
 0x1ad   :  { %v1108_v21 = vmul.f32 %v2891_v12, %v1032_v49  ;;  %v1302_v33 = vrot.slane %v1301_v17, 2  ;;  %v1111_v43 = vmul.f32 %v2880_v44, %v1035_v37  ;;  %v2493_v44 = vld [vmem:[#allocation10 + $0x30] sm:$0xff]  ;;  %v1283_v8 = vrot.slane %v1282_v61, 1  ;;  %v2490_v37 = vld [vmem:[#allocation10 + $0x18] sm:$0xff] }
 0x1ae   :  { %1863 = vmatpush.bf16.msrb.mxu0 %v2493_v44  ;;  %v1363_v49 = vpack.c.bf16 %v1277_v63, %v1277_v63  ;;  %v1256_v53 = vmax.f32 %v1254_v6, %v1255_v3  ;;  %v2508_v3 = vld [vmem:[%s2965_s6] ss:$0 sm:$0xff] }
 0x1af   :  { %v1306_v23 = vmax.f32 %v1104_v16, %v1108_v21  ;;  %v923_v9 = vpop.f32.mrf.mxu2  ;;  %v827_v29 = vpop.f32.mrf.mxu0  ;;  %v1303_v30 = vmax.f32 %v1301_v17, %v1302_v33  ;;  %v1284_v5 = vmax.f32 %v1282_v61, %v1283_v8  ;;  %v2488_v61 = vld [vmem:[#allocation10 + $0x8] sm:$0xff] }
 0x1b0   :  { %v972_v27 = vpop.f32.mrf.mxu3  ;;  %v876_v34 = vpop.f32.mrf.mxu1 }
 0x1b1   :  { %v1307_v31 = vrot.slane %v1306_v23, 4  ;;  %v877_v38 = vadd.f32 %v876_v34, %v827_v29  ;;  %v973_v36 = vadd.f32 %v972_v27, %v923_v9  ;;  %v1304_v58 = vrot.slane %v1303_v30, 1 }
 0x1b2   :  { %1864 = vmatpush.bf16.msrb.mxu0 %v2492_v52  ;;  %v1360_v29 = vpack.c.bf16 %v1256_v53, %v1256_v53  ;;  %v1364_v34 = vpack.c.bf16 %v1284_v5, %v1284_v5 }
 0x1b3   :  { %v1308_v40 = vmax.f32 %v1306_v23, %v1307_v31  ;;  %v1039_v41 = vmax.f32 %v877_v38, 0.0  ;;  %v1036_v47 = vmax.f32 %v973_v36, 0.0  ;;  %v1305_v7 = vmax.f32 %v1303_v30, %v1304_v58 }
 0x1b4   :  { %v1529_v31 = vsel %vm1511_vm3, %v1491_v32, %v2919_v15  ;;  %v1496_v42 = vunpack.c.l.b16 %v1364_v34 }
 0x1b5   :  { %v1115_v20 = vmul.f32 %v2882_v55, %v1039_v41  ;;  %v1309_v14 = vrot.slane %v1308_v40, 2  ;;  %v1112_v1 = vmul.f32 %v2887_v54, %v1036_v47  ;;  %v1367_v17 = vpack.c.bf16 %v1305_v7, %v1305_v7  ;;  %v2491_v54 = vld [vmem:[#allocation10 + $0x20] sm:$0xff] }
 0x1b6   :  { %1865 = vmatpush.bf16.msrb.mxu0 %v2491_v54  ;;  %v1492_v41 = vunpack.c.l.b16 %v1360_v29 }
 0x1b7   :  { %v925_v19 = vpop.f32.mrf.mxu2  ;;  %v1327_v18 = vmax.f32 %v1111_v43, %v1115_v20  ;;  %v1310_v55 = vmax.f32 %v1308_v40, %v1309_v14  ;;  %v1499_v25 = vunpack.c.l.b16 %v1367_v17 }
 0x1b8   :  { %v974_v56 = vpop.f32.mrf.mxu3 }
 0x1b9   :  { %v975_v59 = vadd.f32 %v974_v56, %v925_v19  ;;  %v1328_v57 = vrot.slane %v1327_v18, 4  ;;  %v1311_v13 = vrot.slane %v1310_v55, 1  ;;  %v1536_v19 = vsel %vm1511_vm3, %v1492_v41, %v2922_v10 }
 0x1ba   :  { %1866 = vmatpush.bf16.msrb.mxu0 %v2490_v37  ;;  %v1537_v51 = vsel %vm1513_vm4, %v1496_v42, %v1536_v19 }
 0x1bb   :  { %v1040_v62 = vmax.f32 %v975_v59, 0.0  ;;  %v1329_v0 = vmax.f32 %v1327_v18, %v1328_v57  ;;  %v1312_v9 = vmax.f32 %v1310_v55, %v1311_v13 }
 0x1bd   :  { %v1116_v2 = vmul.f32 %v2891_v12, %v1040_v62  ;;  %v1330_v46 = vrot.slane %v1329_v0, 2  ;;  %v1495_v12 = vunpack.c.l.b16 %v1363_v49  ;;  %v1368_v39 = vpack.c.bf16 %v1312_v9, %v1312_v9  ;;  %v2487_v62 = vld [vmem:[#allocation10] sm:$0xff] }
 0x1be   :  { %1867 = vmatpush.bf16.msrb.mxu0 %v2489_v60 }
 0x1bf   :  { %v1334_v11 = vmax.f32 %v1112_v1, %v1116_v2  ;;  %v1331_v16 = vmax.f32 %v1329_v0, %v1330_v46  ;;  %v1530_v38 = vsel %vm1513_vm4, %v1495_v12, %v1529_v31  ;;  %v1500_v15 = vunpack.c.l.b16 %v1368_v39 }
 0x1c0   :  { %v1531_v40 = vsel %vm1515_vm5, %v1499_v25, %v1530_v38 }
 0x1c1   :  { %v1335_v21 = vrot.slane %v1334_v11, 4  ;;  %v1332_v22 = vrot.slane %v1331_v16, 1  ;;  %v1538_v56 = vsel %vm1515_vm5, %v1500_v15, %v1537_v51 }
 0x1c2   :  { %1868 = vmatpush.bf16.msrb.mxu0 %v2488_v61 }
 0x1c3   :  { %v1336_v23 = vmax.f32 %v1334_v11, %v1335_v21  ;;  %v1333_v24 = vmax.f32 %v1331_v16, %v1332_v22 }
 0x1c5   :  { %v1337_v27 = vrot.slane %v1336_v23, 2  ;;  %v1371_v33 = vpack.c.bf16 %v1333_v24, %v1333_v24 }
 0x1c6   :  { %1869 = vmatpush.bf16.msrb.mxu0 %v2487_v62 }
 0x1c7   :  { %v1338_v35 = vmax.f32 %v1336_v23, %v1337_v27  ;;  %v1503_v26 = vunpack.c.l.b16 %v1371_v33 }
 0x1c9   :  { %v1339_v28 = vrot.slane %v1338_v35, 1  ;;  %v1749_v30 = vpop.f32.mrf.mxu0  ;;  %v1532_v36 = vsel %vm1517_vm6, %v1503_v26, %v1531_v40 }
 0x1ca   :  { %v1542_v20 = vpack.c.b16 %v1532_v36, %v1532_v36  ;;  %v1750_v18 = vadd.f32 %v2507_v45, %v1749_v30 }
 0x1cb   :  { %v1340_v43 = vmax.f32 %v1338_v35, %v1339_v28 }
 0x1cc   :  { %1774 = vmatmul.bf16.vlgmr.msra.gmra.mxu2 %v1542_v20 }
 0x1cd   :  { %v1372_v50 = vpack.c.bf16 %v1340_v43, %v1340_v43 }
 0x1cf   :  { %v1504_v14 = vunpack.c.l.b16 %v1372_v50 }
 0x1d1   :  { %v1762_v58 = vpop.f32.mrf.mxu1  ;;  %v1539_v47 = vsel %vm1517_vm6, %v1504_v14, %v1538_v56  ;;  %v1751_v48 = vpop.f32.mrf.mxu0 }
 0x1d2   :  { %v1763_v59 = vadd.f32 %v1762_v58, %v1750_v18  ;;  %v1543_v6 = vpack.c.b16 %v1539_v47, %v1539_v47 }
 0x1d4   :  { %1787 = vmatmul.bf16.vlgmr.msra.gmra.mxu3 %v1543_v6 }
 0x1d9   :  { %v1764_v57 = vpop.f32.mrf.mxu1 }
 0x24f   :  { %v1775_v10 = vpop.f32.mrf.mxu2 }
 0x250   :  { %v1776_v44 = vadd.f32 %v1775_v10, %v1763_v59 }
 0x257   :  { %v1788_v63 = vpop.f32.mrf.mxu3  ;;  %v1777_v0 = vpop.f32.mrf.mxu2 }
 0x258   :  { %v1789_v55 = vadd.f32 %v1788_v63, %v1776_v44 }
 0x25a   :  { %v1792_v7 = vmax.f32 %v1789_v55, 0.0 }
 0x25c   :  { %v1793_v1 = vpack.c.bf16 %v1792_v7, %v1792_v7 }
 0x25e   :  { %1870 = vmatmul.bf16.vlgmr.msrb.gmra.mxu0 %v1793_v1 }
 0x25f   :  { %v1790_v2 = vpop.f32.mrf.mxu3 }
 0x2db   :  { %v1871_v46 = vpop.f32.mrf.mxu0 }
 0x2dc   :  { %v1872_v4 = vadd.f32 %v2508_v3, %v1871_v46 }
 0x2de   :  { %1875 = vst [vmem:[#allocation11] sm:$0xff] %v1872_v4 }
 0x2df   :  { %1886 = dma.vmem_to_hbm [thread:$0]  %s1882_s8, 128, %s1884_s11, [#allocation4]  }
 0x2e3   :  { %v1873_v8 = vpop.f32.mrf.mxu0 }
 0x2e4   :  { %2659 = dma.done.wait [#allocation4], 128  }
 0x2e5   :  { %2660 = vsyncadd [#allocation4], 4294967168 }
 0x2e6   :  { %1891 = vsyncpa [#allocation3], 1 }
 0x2e7   :  { %1892 = vsyncpa [#allocation6], 1 }
 0x2e8   :  { %1893 = vsyncpa [#allocation9], 1 }
 0x2e9   :  { %1894 = vsyncpa [#allocation4], 1 }

</bundles_post_ra>
